<compile_context>
chip_gen: v6e
topology: v6e:2x2x1
jax: 0.10.0
libtpu: 0.0.40
codegen_flags: <defaults>
</compile_context>

<pallas_src>
import functools
import math

import jax
import jax.numpy as jnp
from jax import lax
from jax.experimental import pallas as pl
from jax.experimental.pallas import tpu as pltpu


# ----------------------------- helpers (used identically in kernel & ref) ---
def _sigmoid(x):
    return 1.0 / (1.0 + jnp.exp(-x))


def _softplus(x):
    # numerically safe softplus built only from exp/log/abs/max (Mosaic-safe)
    return jnp.maximum(x, 0.0) + jnp.log(1.0 + jnp.exp(-jnp.abs(x)))


# ----------------------------- per-layer Mamba block kernel -----------------
def _mamba_block_kernel(hs_ref, norm_w_ref, in_w_ref, conv_w_ref, conv_b_ref,
                        xproj_w_ref, dtproj_w_ref, dtproj_b_ref, aneg_ref,
                        d_ref, out_w_ref, o_ref,
                        dtbuf, xcbuf, bbuf, cbuf, ybuf,
                        *, L, E, N, K, R, eps, chunk):
    bf16 = jnp.bfloat16
    hs = hs_ref[0].astype(jnp.float32)                        # (L, D) f32

    # ---- RMSNorm (pre-norm, f32) ----
    var = jnp.mean(hs * hs, axis=-1, keepdims=True)
    xn = hs * lax.rsqrt(var + eps) * norm_w_ref[0]

    # ---- in_proj: bf16 MXU dot, f32 accumulation ----
    xz = jnp.dot(xn.astype(bf16), in_w_ref[...],
                 preferred_element_type=jnp.float32)          # (L, 2E)
    x = xz[:, :E]                                             # (L, E) f32
    z = xz[:, E:]                                             # (L, E) f32

    # ---- depthwise causal conv1d + SiLU (shifted views built in-register) ---
    acc = jnp.broadcast_to(conv_b_ref[...], (L, E))
    for k in range(K):
        s = K - 1 - k
        if s == 0:
            shifted = x
        else:
            shifted = jnp.concatenate(
                [jnp.zeros((s, E), jnp.float32), x[:L - s, :]], axis=0)
        acc = acc + shifted * conv_w_ref[k:k + 1, :]
    xc = acc * _sigmoid(acc)                                  # (L, E) f32

    # ---- x_proj -> (delta, B, C): bf16 MXU dot ----
    dbc = jnp.dot(xc.astype(bf16), xproj_w_ref[...],
                  preferred_element_type=jnp.float32)         # (L, R+2N)
    delta = dbc[:, :R]                                        # (L, R)

    # ---- dt_proj as a real matmul (MXU) + softplus in f32 ----
    dt = jnp.dot(delta.astype(bf16), dtproj_w_ref[...],
                 preferred_element_type=jnp.float32) + dtproj_b_ref[...]
    dt = _softplus(dt)                                        # (L, E) f32

    # ---- stage scan operands in VMEM scratch for aligned chunked access ----
    dtbuf[...] = dt
    xcbuf[...] = xc
    bbuf[...] = dbc[:, R:R + N]                               # (L, N)
    cbuf[...] = dbc[:, R + N:R + 2 * N]                       # (L, N)

    aneg = aneg_ref[...]                                      # (N, E): E on lanes
    dvec = d_ref[...]                                         # (1, E)

    # ---- selective scan: fori over chunks, static unroll inside ------------
    def chunk_body(c, h):
        base = pl.multiple_of(c * chunk, chunk)
        dt_c = dtbuf[pl.ds(base, chunk), :]                   # (chunk, E)
        x_c = xcbuf[pl.ds(base, chunk), :]                    # (chunk, E)
        b_ct = bbuf[pl.ds(base, chunk), :].T                  # (N, chunk)
        c_ct = cbuf[pl.ds(base, chunk), :].T                  # (N, chunk)
        dtx = dt_c * x_c                                      # (chunk, E)
        rows = []
        for t in range(chunk):                                # static unroll
            dA = jnp.exp(dt_c[t:t + 1, :] * aneg)             # (N, E)  EUP
            dBx = dtx[t:t + 1, :] * b_ct[:, t:t + 1]          # (N, E)
            h = dA * h + dBx
            y_t = (jnp.sum(h * c_ct[:, t:t + 1], axis=0, keepdims=True)
                   + dvec * x_c[t:t + 1, :])                  # (1, E)
            rows.append(y_t)
        ybuf[pl.ds(base, chunk), :] = jnp.concatenate(rows, axis=0)
        return h

    lax.fori_loop(0, L // chunk, chunk_body, jnp.zeros((N, E), jnp.float32))

    # ---- gate with SiLU(z), out_proj (bf16 MXU), residual add in f32 -------
    y = ybuf[...] * (z * _sigmoid(z))                         # (L, E) f32
    out = jnp.dot(y.astype(bf16), out_w_ref[...],
                  preferred_element_type=jnp.float32)         # (L, D) f32
    o_ref[0] = (hs + out).astype(o_ref.dtype)


def mamba_block_forward(hs, w, *, d_conv, d_state, dt_rank, eps):
    B, L, D = hs.shape
    E = w["out_w"].shape[0]
    chunk = 1
    for cand in (8, 4, 2, 1):
        if L % cand == 0:
            chunk = cand
            break
    weights = [w["norm_w"], w["in_w"], w["conv_w"], w["conv_b"], w["xproj_w"],
               w["dtproj_w"], w["dtproj_b"], w["a_neg"], w["d"], w["out_w"]]

    def full_spec(arr):
        nd = arr.ndim
        return pl.BlockSpec(arr.shape, lambda b, _nd=nd: (0,) * _nd)

    kern = functools.partial(_mamba_block_kernel, L=L, E=E, N=d_state,
                             K=d_conv, R=dt_rank, eps=eps, chunk=chunk)
    return pl.pallas_call(
        kern,
        out_shape=jax.ShapeDtypeStruct((B, L, D), jnp.float32),
        grid=(B,),
        in_specs=[pl.BlockSpec((1, L, D), lambda b: (b, 0, 0))]
                 + [full_spec(arr) for arr in weights],
        out_specs=pl.BlockSpec((1, L, D), lambda b: (b, 0, 0)),
        scratch_shapes=[pltpu.VMEM((L, E), jnp.float32),        # dt
                        pltpu.VMEM((L, E), jnp.float32),        # conv+SiLU x
                        pltpu.VMEM((L, d_state), jnp.float32),  # B
                        pltpu.VMEM((L, d_state), jnp.float32),  # C
                        pltpu.VMEM((L, E), jnp.float32)],       # scan outputs
        compiler_params=pltpu.CompilerParams(
            dimension_semantics=("parallel",),
            vmem_limit_bytes=64 * 1024 * 1024),
    )(hs, *weights)


# ----------------------------- final RMSNorm + tied lm_head kernel ----------
def _head_kernel(hs_ref, norm_w_ref, emb_t_ref, o_ref, *, eps):
    hs = hs_ref[0].astype(jnp.float32)
    var = jnp.mean(hs * hs, axis=-1, keepdims=True)
    xn = (hs * lax.rsqrt(var + eps) * norm_w_ref[0]).astype(jnp.bfloat16)
    o_ref[0] = jnp.dot(xn, emb_t_ref[...],
                       preferred_element_type=jnp.float32).astype(o_ref.dtype)


def head_forward(hs, norm_f_w, emb_t_bf16, *, eps):
    B, L, D = hs.shape
    V = emb_t_bf16.shape[1]
    TV = V                                   # fall back: full vocab in one tile
    for cand in (2048, 1024, 512, 256, 128):
        if V % cand == 0:
            TV = cand
            break
    return pl.pallas_call(
        functools.partial(_head_kernel, eps=eps),
        out_shape=jax.ShapeDtypeStruct((B, L, V), jnp.float32),
        grid=(B, V // TV),
        in_specs=[pl.BlockSpec((1, L, D), lambda b, v: (b, 0, 0)),
                  pl.BlockSpec(norm_f_w.shape, lambda b, v: (0, 0)),
                  pl.BlockSpec((D, TV), lambda b, v: (0, v))],
        out_specs=pl.BlockSpec((1, L, TV), lambda b, v: (b, 0, v)),
        compiler_params=pltpu.CompilerParams(
            dimension_semantics=("parallel", "parallel"),
            vmem_limit_bytes=64 * 1024 * 1024),
    )(hs, norm_f_w, emb_t_bf16)


# ----------------------------- full model forward ---------------------------
def mamba_forward(input_ids, emb, layers, norm_f_w, cfg):
    # TODO(synk): the embedding token gather is data-dependent; done in plain JAX.
    hs = jnp.take(emb, input_ids, axis=0).astype(jnp.float32)   # (B, L, D) f32
    bf16 = jnp.bfloat16
    for p in layers:
        w = dict(
            norm_w=p["norm_w"],
            in_w=p["in_proj_w_t"].astype(bf16),
            conv_w=p["conv_w"],
            conv_b=p["conv_b"],
            xproj_w=p["x_proj_w_t"].astype(bf16),
            dtproj_w=p["dt_proj_w_t"].astype(bf16),
            dtproj_b=p["dt_proj_b"],
            a_neg=(-jnp.exp(p["A_log"])).T,     # hoisted out of the kernel; (N, E)
            d=p["D"],
            out_w=p["out_proj_w_t"].astype(bf16),
        )
        hs = mamba_block_forward(hs, w, d_conv=cfg["d_conv"],
                                 d_state=cfg["d_state"],
                                 dt_rank=cfg["dt_rank"], eps=cfg["eps"])
    return head_forward(hs, norm_f_w, emb.T.astype(bf16), eps=cfg["eps"])


# ----------------------------- pure-JAX reference (mirrors bf16 matmuls) ----
def ref_forward(input_ids, emb, layers, norm_f_w, cfg):
    eps, K, N, R = cfg["eps"], cfg["d_conv"], cfg["d_state"], cfg["dt_rank"]
    bf = jnp.bfloat16
    hs = jnp.take(emb, input_ids, axis=0).astype(jnp.float32)
    B, L, D = hs.shape
    for p in layers:
        E = p["out_proj_w_t"].shape[0]
        res = hs
        xn = hs * lax.rsqrt(jnp.mean(hs * hs, -1, keepdims=True) + eps) * p["norm_w"][0]
        xz = jnp.einsum("bld,de->ble", xn.astype(bf), p["in_proj_w_t"].astype(bf),
                        preferred_element_type=jnp.float32)
        x, z = xz[..., :E], xz[..., E:]
        xpad = jnp.pad(x, ((0, 0), (K - 1, 0), (0, 0)))
        acc = jnp.broadcast_to(p["conv_b"][0], x.shape)
        for k in range(K):
            acc = acc + xpad[:, k:k + L, :] * p["conv_w"][k]
        xc = acc * _sigmoid(acc)
        dbc = jnp.einsum("ble,ef->blf", xc.astype(bf), p["x_proj_w_t"].astype(bf),
                         preferred_element_type=jnp.float32)
        delta, Bm, Cm = dbc[..., :R], dbc[..., R:R + N], dbc[..., R + N:R + 2 * N]
        dt = _softplus(jnp.einsum("blr,re->ble", delta.astype(bf),
                                  p["dt_proj_w_t"].astype(bf),
                                  preferred_element_type=jnp.float32)
                       + p["dt_proj_b"][0])
        A = -jnp.exp(p["A_log"])
        h = jnp.zeros((B, E, N), jnp.float32)
        ys = []
        for t in range(L):
            dA = jnp.exp(dt[:, t, :, None] * A)
            dBx = dt[:, t, :, None] * Bm[:, t, None, :] * xc[:, t, :, None]
            h = dA * h + dBx
            ys.append(jnp.sum(h * Cm[:, t, None, :], -1) + p["D"][0] * xc[:, t, :])
        y = jnp.stack(ys, axis=1) * (z * _sigmoid(z))
        hs = res + jnp.einsum("ble,ed->bld", y.astype(bf),
                              p["out_proj_w_t"].astype(bf),
                              preferred_element_type=jnp.float32)
    xn = hs * lax.rsqrt(jnp.mean(hs * hs, -1, keepdims=True) + eps) * norm_f_w[0]
    return jnp.einsum("bld,dv->blv", xn.astype(bf), emb.T.astype(bf),
                      preferred_element_type=jnp.float32)


# ----------------------------- deterministic parameter init -----------------
def init_params(key, *, vocab, d_model, n_layer, d_state, d_conv, expand, dt_rank):
    E = expand * d_model
    keys = jax.random.split(key, 1 + n_layer)
    emb = (jax.random.normal(keys[0], (vocab, d_model), jnp.float32) * 0.02)
    layers = []
    for i in range(n_layer):
        k = jax.random.split(keys[1 + i], 8)
        dt = jnp.exp(jax.random.uniform(k[5], (1, E))
                     * (math.log(0.1) - math.log(0.001)) + math.log(0.001))
        layers.append(dict(
            norm_w=jnp.ones((1, d_model), jnp.float32),
            in_proj_w_t=jax.random.normal(k[0], (d_model, 2 * E), jnp.float32) * 0.05,
            conv_w=jax.random.normal(k[1], (d_conv, E), jnp.float32) * 0.2,
            conv_b=jax.random.normal(k[2], (1, E), jnp.float32) * 0.05,
            x_proj_w_t=jax.random.normal(k[3], (E, dt_rank + 2 * d_state), jnp.float32) * 0.05,
            dt_proj_w_t=jax.random.normal(k[4], (dt_rank, E), jnp.float32) * 0.2,
            dt_proj_b=jnp.log(jnp.expm1(dt)),                       # inverse softplus
            A_log=jnp.log(jnp.tile(jnp.arange(1, d_state + 1, dtype=jnp.float32)[None, :],
                                   (E, 1))),
            D=jnp.ones((1, E), jnp.float32),
            out_proj_w_t=jax.random.normal(k[6], (E, d_model), jnp.float32) * 0.05,
        ))
    norm_f_w = jnp.ones((1, d_model), jnp.float32)
    return emb, layers, norm_f_w


if __name__ == "__main__":
    cfg = dict(d_model=32, n_layer=2, d_state=16, d_conv=4, expand=2,
               padded_vocab_size=128, dt_rank=math.ceil(32 / 16), eps=1e-5)
    B, L = 2, 8

    root = jax.random.PRNGKey(0)
    k_params, k_ids = jax.random.split(root)
    emb, layers, norm_f_w = init_params(
        k_params, vocab=cfg["padded_vocab_size"], d_model=cfg["d_model"],
        n_layer=cfg["n_layer"], d_state=cfg["d_state"], d_conv=cfg["d_conv"],
        expand=cfg["expand"], dt_rank=cfg["dt_rank"])
    input_ids = jax.random.randint(k_ids, (B, L), 0, cfg["padded_vocab_size"])

    logits = mamba_forward(input_ids, emb, layers, norm_f_w, cfg)
    logits = jax.block_until_ready(logits)

    assert logits.shape == (B, L, cfg["padded_vocab_size"])
    assert bool(jnp.all(jnp.isfinite(logits)))

    ref = ref_forward(input_ids, emb, layers, norm_f_w, cfg)
    assert bool(jnp.allclose(logits, ref, rtol=1e-2, atol=2e-3)), (
        "max abs err %g" % float(jnp.max(jnp.abs(logits - ref))))

    print("KERNEL_OK")
</pallas_src>

<mosaic_0001>
module attributes {stable_mosaic.version = 11 : i64} {
  func.func @_mamba_block_kernel(%arg0: i32, %arg1: memref<1x8x32xf32, #tpu.memory_space<vmem>>, %arg2: memref<1x32xf32, #tpu.memory_space<vmem>>, %arg3: memref<32x128xbf16, #tpu.memory_space<vmem>>, %arg4: memref<4x64xf32, #tpu.memory_space<vmem>>, %arg5: memref<1x64xf32, #tpu.memory_space<vmem>>, %arg6: memref<64x34xbf16, #tpu.memory_space<vmem>>, %arg7: memref<2x64xbf16, #tpu.memory_space<vmem>>, %arg8: memref<1x64xf32, #tpu.memory_space<vmem>>, %arg9: memref<16x64xf32, #tpu.memory_space<vmem>>, %arg10: memref<1x64xf32, #tpu.memory_space<vmem>>, %arg11: memref<64x32xbf16, #tpu.memory_space<vmem>>, %arg12: memref<1x8x32xf32, #tpu.memory_space<vmem>>, %arg13: memref<8x64xf32, #tpu.memory_space<vmem>>, %arg14: memref<8x64xf32, #tpu.memory_space<vmem>>, %arg15: memref<8x16xf32, #tpu.memory_space<vmem>>, %arg16: memref<8x16xf32, #tpu.memory_space<vmem>>, %arg17: memref<8x64xf32, #tpu.memory_space<vmem>>) attributes {dimension_semantics = [#tpu.dimension_semantics<parallel>], iteration_bounds = array<i64: 2>, scalar_prefetch = 0 : i64, scratch_operands = 5 : i64, tpu.core_type = #tpu.core_type<tc>, window_params = [{transform_indices = @transform_0, window_bounds = array<i64: 1, 8, 32>}, {pipeline_mode = #tpu.pipeline_mode<synchronous>, transform_indices = @transform_1, window_bounds = array<i64: 1, 32>}, {pipeline_mode = #tpu.pipeline_mode<synchronous>, transform_indices = @transform_2, window_bounds = array<i64: 32, 128>}, {pipeline_mode = #tpu.pipeline_mode<synchronous>, transform_indices = @transform_3, window_bounds = array<i64: 4, 64>}, {pipeline_mode = #tpu.pipeline_mode<synchronous>, transform_indices = @transform_4, window_bounds = array<i64: 1, 64>}, {pipeline_mode = #tpu.pipeline_mode<synchronous>, transform_indices = @transform_5, window_bounds = array<i64: 64, 34>}, {pipeline_mode = #tpu.pipeline_mode<synchronous>, transform_indices = @transform_6, window_bounds = array<i64: 2, 64>}, {pipeline_mode = #tpu.pipeline_mode<synchronous>, transform_indices = @transform_7, window_bounds = array<i64: 1, 64>}, {pipeline_mode = #tpu.pipeline_mode<synchronous>, transform_indices = @transform_8, window_bounds = array<i64: 16, 64>}, {pipeline_mode = #tpu.pipeline_mode<synchronous>, transform_indices = @transform_9, window_bounds = array<i64: 1, 64>}, {pipeline_mode = #tpu.pipeline_mode<synchronous>, transform_indices = @transform_10, window_bounds = array<i64: 64, 32>}, {transform_indices = @transform_11, window_bounds = array<i64: 1, 8, 32>}]} {
    %c0 = arith.constant 0 : index
    %c0_0 = arith.constant 0 : index
    %c0_1 = arith.constant 0 : index
    %0 = vector.load %arg1[%c0, %c0_0, %c0_1] : memref<1x8x32xf32, #tpu.memory_space<vmem>>, vector<1x8x32xf32>
    %1 = vector.shape_cast %0 : vector<1x8x32xf32> to vector<8x32xf32>
    %2 = arith.mulf %1, %1 : vector<8x32xf32>
    %cst = arith.constant dense<0.000000e+00> : vector<8xf32>
    %3 = vector.multi_reduction <add>, %2, %cst [1] : vector<8x32xf32> to vector<8xf32>
    %4 = vector.shape_cast %3 : vector<8xf32> to vector<8x1xf32>
    %cst_2 = arith.constant 3.200000e+01 : f32
    %5 = vector.broadcast %cst_2 : f32 to vector<8x1xf32>
    %6 = arith.divf %4, %5 : vector<8x1xf32>
    %cst_3 = arith.constant 9.99999974E-6 : f32
    %7 = vector.broadcast %cst_3 : f32 to vector<8x1xf32>
    %8 = arith.addf %6, %7 : vector<8x1xf32>
    %9 = math.rsqrt %8 : vector<8x1xf32>
    %10 = vector.broadcast %9 : vector<8x1xf32> to vector<8x32xf32>
    %11 = arith.mulf %1, %10 : vector<8x32xf32>
    %c0_4 = arith.constant 0 : index
    %c0_5 = arith.constant 0 : index
    %12 = vector.load %arg2[%c0_4, %c0_5] : memref<1x32xf32, #tpu.memory_space<vmem>>, vector<1x32xf32>
    %13 = vector.shape_cast %12 : vector<1x32xf32> to vector<32xf32>
    %14 = vector.shape_cast %13 : vector<32xf32> to vector<1x32xf32>
    %15 = vector.broadcast %14 : vector<1x32xf32> to vector<8x32xf32>
    %16 = arith.mulf %11, %15 : vector<8x32xf32>
    %17 = arith.truncf %16 : vector<8x32xf32> to vector<8x32xbf16>
    %c0_6 = arith.constant 0 : index
    %c0_7 = arith.constant 0 : index
    %18 = vector.load %arg3[%c0_6, %c0_7] : memref<32x128xbf16, #tpu.memory_space<vmem>>, vector<32x128xbf16>
    %cst_8 = arith.constant dense<0.000000e+00> : vector<8x128xf32>
    %19 = tpu.matmul %17, %18, %cst_8 {dimension_numbers = #tpu.dot_dimension_numbers<[1], [0], [0], [1], [0, 0, 1, 1], [], []>} : vector<8x32xbf16>, vector<32x128xbf16>, vector<8x128xf32> -> vector<8x128xf32>
    %20 = vector.extract_strided_slice %19 {offsets = [0, 0], sizes = [8, 64], strides = [1, 1]} : vector<8x128xf32> to vector<8x64xf32>
    %21 = vector.extract_strided_slice %19 {offsets = [0, 64], sizes = [8, 64], strides = [1, 1]} : vector<8x128xf32> to vector<8x64xf32>
    %c0_9 = arith.constant 0 : index
    %c0_10 = arith.constant 0 : index
    %22 = vector.load %arg5[%c0_9, %c0_10] : memref<1x64xf32, #tpu.memory_space<vmem>>, vector<1x64xf32>
    %23 = vector.shape_cast %22 : vector<1x64xf32> to vector<1x64xf32>
    %24 = vector.broadcast %23 : vector<1x64xf32> to vector<8x64xf32>
    %cst_11 = arith.constant 0.000000e+00 : f32
    %25 = vector.broadcast %cst_11 : f32 to vector<3x64xf32>
    %26 = vector.extract_strided_slice %20 {offsets = [0, 0], sizes = [5, 64], strides = [1, 1]} : vector<8x64xf32> to vector<5x64xf32>
    %27 = tpu.concatenate %25, %26 in 0 : vector<3x64xf32>, vector<5x64xf32> -> vector<8x64xf32>
    %c0_12 = arith.constant 0 : index
    %c0_13 = arith.constant 0 : index
    %28 = vector.load %arg4[%c0_12, %c0_13] : memref<4x64xf32, #tpu.memory_space<vmem>>, vector<1x64xf32>
    %29 = vector.broadcast %28 : vector<1x64xf32> to vector<8x64xf32>
    %30 = arith.mulf %27, %29 : vector<8x64xf32>
    %31 = arith.addf %24, %30 : vector<8x64xf32>
    %cst_14 = arith.constant 0.000000e+00 : f32
    %32 = vector.broadcast %cst_14 : f32 to vector<2x64xf32>
    %33 = vector.extract_strided_slice %20 {offsets = [0, 0], sizes = [6, 64], strides = [1, 1]} : vector<8x64xf32> to vector<6x64xf32>
    %34 = tpu.concatenate %32, %33 in 0 : vector<2x64xf32>, vector<6x64xf32> -> vector<8x64xf32>
    %c1 = arith.constant 1 : index
    %c0_15 = arith.constant 0 : index
    %35 = vector.load %arg4[%c1, %c0_15] : memref<4x64xf32, #tpu.memory_space<vmem>>, vector<1x64xf32>
    %36 = vector.broadcast %35 : vector<1x64xf32> to vector<8x64xf32>
    %37 = arith.mulf %34, %36 : vector<8x64xf32>
    %38 = arith.addf %31, %37 : vector<8x64xf32>
    %cst_16 = arith.constant 0.000000e+00 : f32
    %39 = vector.broadcast %cst_16 : f32 to vector<1x64xf32>
    %40 = vector.extract_strided_slice %20 {offsets = [0, 0], sizes = [7, 64], strides = [1, 1]} : vector<8x64xf32> to vector<7x64xf32>
    %41 = tpu.concatenate %39, %40 in 0 : vector<1x64xf32>, vector<7x64xf32> -> vector<8x64xf32>
    %c2 = arith.constant 2 : index
    %c0_17 = arith.constant 0 : index
    %42 = vector.load %arg4[%c2, %c0_17] : memref<4x64xf32, #tpu.memory_space<vmem>>, vector<1x64xf32>
    %43 = vector.broadcast %42 : vector<1x64xf32> to vector<8x64xf32>
    %44 = arith.mulf %41, %43 : vector<8x64xf32>
    %45 = arith.addf %38, %44 : vector<8x64xf32>
    %c3 = arith.constant 3 : index
    %c0_18 = arith.constant 0 : index
    %46 = vector.load %arg4[%c3, %c0_18] : memref<4x64xf32, #tpu.memory_space<vmem>>, vector<1x64xf32>
    %47 = vector.broadcast %46 : vector<1x64xf32> to vector<8x64xf32>
    %48 = arith.mulf %20, %47 : vector<8x64xf32>
    %49 = arith.addf %45, %48 : vector<8x64xf32>
    %cst_19 = arith.constant 0.000000e+00 : f32
    %50 = vector.broadcast %cst_19 : f32 to vector<8x64xf32>
    %51 = arith.subf %50, %49 : vector<8x64xf32>
    %52 = math.exp %51 : vector<8x64xf32>
    %cst_20 = arith.constant 1.000000e+00 : f32
    %53 = vector.broadcast %cst_20 : f32 to vector<8x64xf32>
    %54 = arith.addf %53, %52 : vector<8x64xf32>
    %cst_21 = arith.constant 1.000000e+00 : f32
    %55 = vector.broadcast %cst_21 : f32 to vector<8x64xf32>
    %56 = arith.divf %55, %54 : vector<8x64xf32>
    %57 = arith.mulf %49, %56 : vector<8x64xf32>
    %58 = arith.truncf %57 : vector<8x64xf32> to vector<8x64xbf16>
    %c0_22 = arith.constant 0 : index
    %c0_23 = arith.constant 0 : index
    %59 = vector.load %arg6[%c0_22, %c0_23] : memref<64x34xbf16, #tpu.memory_space<vmem>>, vector<64x34xbf16>
    %cst_24 = arith.constant dense<0.000000e+00> : vector<8x34xf32>
    %60 = tpu.matmul %58, %59, %cst_24 {dimension_numbers = #tpu.dot_dimension_numbers<[1], [0], [0], [1], [0, 0, 1, 1], [], []>} : vector<8x64xbf16>, vector<64x34xbf16>, vector<8x34xf32> -> vector<8x34xf32>
    %61 = vector.extract_strided_slice %60 {offsets = [0, 0], sizes = [8, 2], strides = [1, 1]} : vector<8x34xf32> to vector<8x2xf32>
    %62 = arith.truncf %61 : vector<8x2xf32> to vector<8x2xbf16>
    %c0_25 = arith.constant 0 : index
    %c0_26 = arith.constant 0 : index
    %63 = vector.load %arg7[%c0_25, %c0_26] : memref<2x64xbf16, #tpu.memory_space<vmem>>, vector<2x64xbf16>
    %cst_27 = arith.constant dense<0.000000e+00> : vector<8x64xf32>
    %64 = tpu.matmul %62, %63, %cst_27 {dimension_numbers = #tpu.dot_dimension_numbers<[1], [0], [0], [1], [0, 0, 1, 1], [], []>} : vector<8x2xbf16>, vector<2x64xbf16>, vector<8x64xf32> -> vector<8x64xf32>
    %c0_28 = arith.constant 0 : index
    %c0_29 = arith.constant 0 : index
    %65 = vector.load %arg8[%c0_28, %c0_29] : memref<1x64xf32, #tpu.memory_space<vmem>>, vector<1x64xf32>
    %66 = vector.broadcast %65 : vector<1x64xf32> to vector<8x64xf32>
    %67 = arith.addf %64, %66 : vector<8x64xf32>
    %cst_30 = arith.constant 0.000000e+00 : f32
    %68 = vector.broadcast %cst_30 : f32 to vector<8x64xf32>
    %69 = arith.maximumf %67, %68 : vector<8x64xf32>
    %70 = math.absf %67 : vector<8x64xf32>
    %cst_31 = arith.constant 0.000000e+00 : f32
    %71 = vector.broadcast %cst_31 : f32 to vector<8x64xf32>
    %72 = arith.subf %71, %70 : vector<8x64xf32>
    %73 = math.exp %72 : vector<8x64xf32>
    %cst_32 = arith.constant 1.000000e+00 : f32
    %74 = vector.broadcast %cst_32 : f32 to vector<8x64xf32>
    %75 = arith.addf %74, %73 : vector<8x64xf32>
    %76 = math.log %75 : vector<8x64xf32>
    %77 = arith.addf %69, %76 : vector<8x64xf32>
    %c0_33 = arith.constant 0 : index
    %c0_34 = arith.constant 0 : index
    %78 = vector.load %arg13[%c0_33, %c0_34] : memref<8x64xf32, #tpu.memory_space<vmem>>, vector<8x64xf32>
    tpu.vector_store %arg13[%c0_33, %c0_34], %77 {strides = array<i32>} : memref<8x64xf32, #tpu.memory_space<vmem>>, vector<8x64xf32>,
    %c0_35 = arith.constant 0 : index
    %c0_36 = arith.constant 0 : index
    %79 = vector.load %arg14[%c0_35, %c0_36] : memref<8x64xf32, #tpu.memory_space<vmem>>, vector<8x64xf32>
    tpu.vector_store %arg14[%c0_35, %c0_36], %57 {strides = array<i32>} : memref<8x64xf32, #tpu.memory_space<vmem>>, vector<8x64xf32>,
    %80 = vector.extract_strided_slice %60 {offsets = [0, 2], sizes = [8, 16], strides = [1, 1]} : vector<8x34xf32> to vector<8x16xf32>
    %c0_37 = arith.constant 0 : index
    %c0_38 = arith.constant 0 : index
    %81 = vector.load %arg15[%c0_37, %c0_38] : memref<8x16xf32, #tpu.memory_space<vmem>>, vector<8x16xf32>
    tpu.vector_store %arg15[%c0_37, %c0_38], %80 {strides = array<i32>} : memref<8x16xf32, #tpu.memory_space<vmem>>, vector<8x16xf32>,
    %82 = vector.extract_strided_slice %60 {offsets = [0, 18], sizes = [8, 16], strides = [1, 1]} : vector<8x34xf32> to vector<8x16xf32>
    %c0_39 = arith.constant 0 : index
    %c0_40 = arith.constant 0 : index
    %83 = vector.load %arg16[%c0_39, %c0_40] : memref<8x16xf32, #tpu.memory_space<vmem>>, vector<8x16xf32>
    tpu.vector_store %arg16[%c0_39, %c0_40], %82 {strides = array<i32>} : memref<8x16xf32, #tpu.memory_space<vmem>>, vector<8x16xf32>,
    %c0_41 = arith.constant 0 : index
    %c0_42 = arith.constant 0 : index
    %84 = vector.load %arg9[%c0_41, %c0_42] : memref<16x64xf32, #tpu.memory_space<vmem>>, vector<16x64xf32>
    %c0_43 = arith.constant 0 : index
    %c0_44 = arith.constant 0 : index
    %85 = vector.load %arg10[%c0_43, %c0_44] : memref<1x64xf32, #tpu.memory_space<vmem>>, vector<1x64xf32>
    %cst_45 = arith.constant 0.000000e+00 : f32
    %86 = vector.broadcast %cst_45 : f32 to vector<16x64xf32>
    %c0_i32 = arith.constant 0 : i32
    %c8_i32 = arith.constant 8 : i32
    %87 = arith.muli %c0_i32, %c8_i32 : i32
    %88 = tpu.assume_multiple %87, 8 : i32
    %89 = arith.index_cast %88 : i32 to index
    %c0_46 = arith.constant 0 : index
    %90 = vector.load %arg13[%89, %c0_46] : memref<8x64xf32, #tpu.memory_space<vmem>>, vector<8x64xf32>
    %91 = arith.index_cast %88 : i32 to index
    %c0_47 = arith.constant 0 : index
    %92 = vector.load %arg14[%91, %c0_47] : memref<8x64xf32, #tpu.memory_space<vmem>>, vector<8x64xf32>
    %93 = arith.index_cast %88 : i32 to index
    %c0_48 = arith.constant 0 : index
    %94 = vector.load %arg15[%93, %c0_48] : memref<8x16xf32, #tpu.memory_space<vmem>>, vector<8x16xf32>
    %95 = tpu.transpose %94, [1, 0] : vector<8x16xf32> -> vector<16x8xf32>
    %96 = arith.index_cast %88 : i32 to index
    %c0_49 = arith.constant 0 : index
    %97 = vector.load %arg16[%96, %c0_49] : memref<8x16xf32, #tpu.memory_space<vmem>>, vector<8x16xf32>
    %98 = tpu.transpose %97, [1, 0] : vector<8x16xf32> -> vector<16x8xf32>
    %99 = arith.mulf %90, %92 : vector<8x64xf32>
    %100 = vector.extract_strided_slice %90 {offsets = [0, 0], sizes = [1, 64], strides = [1, 1]} : vector<8x64xf32> to vector<1x64xf32>
    %101 = vector.broadcast %100 : vector<1x64xf32> to vector<16x64xf32>
    %102 = arith.mulf %101, %84 : vector<16x64xf32>
    %103 = math.exp %102 : vector<16x64xf32>
    %104 = vector.extract_strided_slice %99 {offsets = [0, 0], sizes = [1, 64], strides = [1, 1]} : vector<8x64xf32> to vector<1x64xf32>
    %105 = vector.extract_strided_slice %95 {offsets = [0, 0], sizes = [16, 1], strides = [1, 1]} : vector<16x8xf32> to vector<16x1xf32>
    %106 = vector.broadcast %104 : vector<1x64xf32> to vector<16x64xf32>
    %107 = vector.broadcast %105 : vector<16x1xf32> to vector<16x64xf32>
    %108 = arith.mulf %106, %107 : vector<16x64xf32>
    %109 = arith.mulf %103, %86 : vector<16x64xf32>
    %110 = arith.addf %109, %108 : vector<16x64xf32>
    %111 = vector.extract_strided_slice %98 {offsets = [0, 0], sizes = [16, 1], strides = [1, 1]} : vector<16x8xf32> to vector<16x1xf32>
    %112 = vector.broadcast %111 : vector<16x1xf32> to vector<16x64xf32>
    %113 = arith.mulf %110, %112 : vector<16x64xf32>
    %cst_50 = arith.constant dense<0.000000e+00> : vector<64xf32>
    %114 = vector.multi_reduction <add>, %113, %cst_50 [0] : vector<16x64xf32> to vector<64xf32>
    %115 = vector.shape_cast %114 : vector<64xf32> to vector<1x64xf32>
    %116 = vector.extract_strided_slice %92 {offsets = [0, 0], sizes = [1, 64], strides = [1, 1]} : vector<8x64xf32> to vector<1x64xf32>
    %117 = arith.mulf %85, %116 : vector<1x64xf32>
    %118 = arith.addf %115, %117 : vector<1x64xf32>
    %119 = vector.extract_strided_slice %90 {offsets = [1, 0], sizes = [1, 64], strides = [1, 1]} : vector<8x64xf32> to vector<1x64xf32>
    %120 = vector.broadcast %119 : vector<1x64xf32> to vector<16x64xf32>
    %121 = arith.mulf %120, %84 : vector<16x64xf32>
    %122 = math.exp %121 : vector<16x64xf32>
    %123 = vector.extract_strided_slice %99 {offsets = [1, 0], sizes = [1, 64], strides = [1, 1]} : vector<8x64xf32> to vector<1x64xf32>
    %124 = vector.extract_strided_slice %95 {offsets = [0, 1], sizes = [16, 1], strides = [1, 1]} : vector<16x8xf32> to vector<16x1xf32>
    %125 = vector.broadcast %123 : vector<1x64xf32> to vector<16x64xf32>
    %126 = vector.broadcast %124 : vector<16x1xf32> to vector<16x64xf32>
    %127 = arith.mulf %125, %126 : vector<16x64xf32>
    %128 = arith.mulf %122, %110 : vector<16x64xf32>
    %129 = arith.addf %128, %127 : vector<16x64xf32>
    %130 = vector.extract_strided_slice %98 {offsets = [0, 1], sizes = [16, 1], strides = [1, 1]} : vector<16x8xf32> to vector<16x1xf32>
    %131 = vector.broadcast %130 : vector<16x1xf32> to vector<16x64xf32>
    %132 = arith.mulf %129, %131 : vector<16x64xf32>
    %cst_51 = arith.constant dense<0.000000e+00> : vector<64xf32>
    %133 = vector.multi_reduction <add>, %132, %cst_51 [0] : vector<16x64xf32> to vector<64xf32>
    %134 = vector.shape_cast %133 : vector<64xf32> to vector<1x64xf32>
    %135 = vector.extract_strided_slice %92 {offsets = [1, 0], sizes = [1, 64], strides = [1, 1]} : vector<8x64xf32> to vector<1x64xf32>
    %136 = arith.mulf %85, %135 : vector<1x64xf32>
    %137 = arith.addf %134, %136 : vector<1x64xf32>
    %138 = vector.extract_strided_slice %90 {offsets = [2, 0], sizes = [1, 64], strides = [1, 1]} : vector<8x64xf32> to vector<1x64xf32>
    %139 = vector.broadcast %138 : vector<1x64xf32> to vector<16x64xf32>
    %140 = arith.mulf %139, %84 : vector<16x64xf32>
    %141 = math.exp %140 : vector<16x64xf32>
    %142 = vector.extract_strided_slice %99 {offsets = [2, 0], sizes = [1, 64], strides = [1, 1]} : vector<8x64xf32> to vector<1x64xf32>
    %143 = vector.extract_strided_slice %95 {offsets = [0, 2], sizes = [16, 1], strides = [1, 1]} : vector<16x8xf32> to vector<16x1xf32>
    %144 = vector.broadcast %142 : vector<1x64xf32> to vector<16x64xf32>
    %145 = vector.broadcast %143 : vector<16x1xf32> to vector<16x64xf32>
    %146 = arith.mulf %144, %145 : vector<16x64xf32>
    %147 = arith.mulf %141, %129 : vector<16x64xf32>
    %148 = arith.addf %147, %146 : vector<16x64xf32>
    %149 = vector.extract_strided_slice %98 {offsets = [0, 2], sizes = [16, 1], strides = [1, 1]} : vector<16x8xf32> to vector<16x1xf32>
    %150 = vector.broadcast %149 : vector<16x1xf32> to vector<16x64xf32>
    %151 = arith.mulf %148, %150 : vector<16x64xf32>
    %cst_52 = arith.constant dense<0.000000e+00> : vector<64xf32>
    %152 = vector.multi_reduction <add>, %151, %cst_52 [0] : vector<16x64xf32> to vector<64xf32>
    %153 = vector.shape_cast %152 : vector<64xf32> to vector<1x64xf32>
    %154 = vector.extract_strided_slice %92 {offsets = [2, 0], sizes = [1, 64], strides = [1, 1]} : vector<8x64xf32> to vector<1x64xf32>
    %155 = arith.mulf %85, %154 : vector<1x64xf32>
    %156 = arith.addf %153, %155 : vector<1x64xf32>
    %157 = vector.extract_strided_slice %90 {offsets = [3, 0], sizes = [1, 64], strides = [1, 1]} : vector<8x64xf32> to vector<1x64xf32>
    %158 = vector.broadcast %157 : vector<1x64xf32> to vector<16x64xf32>
    %159 = arith.mulf %158, %84 : vector<16x64xf32>
    %160 = math.exp %159 : vector<16x64xf32>
    %161 = vector.extract_strided_slice %99 {offsets = [3, 0], sizes = [1, 64], strides = [1, 1]} : vector<8x64xf32> to vector<1x64xf32>
    %162 = vector.extract_strided_slice %95 {offsets = [0, 3], sizes = [16, 1], strides = [1, 1]} : vector<16x8xf32> to vector<16x1xf32>
    %163 = vector.broadcast %161 : vector<1x64xf32> to vector<16x64xf32>
    %164 = vector.broadcast %162 : vector<16x1xf32> to vector<16x64xf32>
    %165 = arith.mulf %163, %164 : vector<16x64xf32>
    %166 = arith.mulf %160, %148 : vector<16x64xf32>
    %167 = arith.addf %166, %165 : vector<16x64xf32>
    %168 = vector.extract_strided_slice %98 {offsets = [0, 3], sizes = [16, 1], strides = [1, 1]} : vector<16x8xf32> to vector<16x1xf32>
    %169 = vector.broadcast %168 : vector<16x1xf32> to vector<16x64xf32>
    %170 = arith.mulf %167, %169 : vector<16x64xf32>
    %cst_53 = arith.constant dense<0.000000e+00> : vector<64xf32>
    %171 = vector.multi_reduction <add>, %170, %cst_53 [0] : vector<16x64xf32> to vector<64xf32>
    %172 = vector.shape_cast %171 : vector<64xf32> to vector<1x64xf32>
    %173 = vector.extract_strided_slice %92 {offsets = [3, 0], sizes = [1, 64], strides = [1, 1]} : vector<8x64xf32> to vector<1x64xf32>
    %174 = arith.mulf %85, %173 : vector<1x64xf32>
    %175 = arith.addf %172, %174 : vector<1x64xf32>
    %176 = vector.extract_strided_slice %90 {offsets = [4, 0], sizes = [1, 64], strides = [1, 1]} : vector<8x64xf32> to vector<1x64xf32>
    %177 = vector.broadcast %176 : vector<1x64xf32> to vector<16x64xf32>
    %178 = arith.mulf %177, %84 : vector<16x64xf32>
    %179 = math.exp %178 : vector<16x64xf32>
    %180 = vector.extract_strided_slice %99 {offsets = [4, 0], sizes = [1, 64], strides = [1, 1]} : vector<8x64xf32> to vector<1x64xf32>
    %181 = vector.extract_strided_slice %95 {offsets = [0, 4], sizes = [16, 1], strides = [1, 1]} : vector<16x8xf32> to vector<16x1xf32>
    %182 = vector.broadcast %180 : vector<1x64xf32> to vector<16x64xf32>
    %183 = vector.broadcast %181 : vector<16x1xf32> to vector<16x64xf32>
    %184 = arith.mulf %182, %183 : vector<16x64xf32>
    %185 = arith.mulf %179, %167 : vector<16x64xf32>
    %186 = arith.addf %185, %184 : vector<16x64xf32>
    %187 = vector.extract_strided_slice %98 {offsets = [0, 4], sizes = [16, 1], strides = [1, 1]} : vector<16x8xf32> to vector<16x1xf32>
    %188 = vector.broadcast %187 : vector<16x1xf32> to vector<16x64xf32>
    %189 = arith.mulf %186, %188 : vector<16x64xf32>
    %cst_54 = arith.constant dense<0.000000e+00> : vector<64xf32>
    %190 = vector.multi_reduction <add>, %189, %cst_54 [0] : vector<16x64xf32> to vector<64xf32>
    %191 = vector.shape_cast %190 : vector<64xf32> to vector<1x64xf32>
    %192 = vector.extract_strided_slice %92 {offsets = [4, 0], sizes = [1, 64], strides = [1, 1]} : vector<8x64xf32> to vector<1x64xf32>
    %193 = arith.mulf %85, %192 : vector<1x64xf32>
    %194 = arith.addf %191, %193 : vector<1x64xf32>
    %195 = vector.extract_strided_slice %90 {offsets = [5, 0], sizes = [1, 64], strides = [1, 1]} : vector<8x64xf32> to vector<1x64xf32>
    %196 = vector.broadcast %195 : vector<1x64xf32> to vector<16x64xf32>
    %197 = arith.mulf %196, %84 : vector<16x64xf32>
    %198 = math.exp %197 : vector<16x64xf32>
    %199 = vector.extract_strided_slice %99 {offsets = [5, 0], sizes = [1, 64], strides = [1, 1]} : vector<8x64xf32> to vector<1x64xf32>
    %200 = vector.extract_strided_slice %95 {offsets = [0, 5], sizes = [16, 1], strides = [1, 1]} : vector<16x8xf32> to vector<16x1xf32>
    %201 = vector.broadcast %199 : vector<1x64xf32> to vector<16x64xf32>
    %202 = vector.broadcast %200 : vector<16x1xf32> to vector<16x64xf32>
    %203 = arith.mulf %201, %202 : vector<16x64xf32>
    %204 = arith.mulf %198, %186 : vector<16x64xf32>
    %205 = arith.addf %204, %203 : vector<16x64xf32>
    %206 = vector.extract_strided_slice %98 {offsets = [0, 5], sizes = [16, 1], strides = [1, 1]} : vector<16x8xf32> to vector<16x1xf32>
    %207 = vector.broadcast %206 : vector<16x1xf32> to vector<16x64xf32>
    %208 = arith.mulf %205, %207 : vector<16x64xf32>
    %cst_55 = arith.constant dense<0.000000e+00> : vector<64xf32>
    %209 = vector.multi_reduction <add>, %208, %cst_55 [0] : vector<16x64xf32> to vector<64xf32>
    %210 = vector.shape_cast %209 : vector<64xf32> to vector<1x64xf32>
    %211 = vector.extract_strided_slice %92 {offsets = [5, 0], sizes = [1, 64], strides = [1, 1]} : vector<8x64xf32> to vector<1x64xf32>
    %212 = arith.mulf %85, %211 : vector<1x64xf32>
    %213 = arith.addf %210, %212 : vector<1x64xf32>
    %214 = vector.extract_strided_slice %90 {offsets = [6, 0], sizes = [1, 64], strides = [1, 1]} : vector<8x64xf32> to vector<1x64xf32>
    %215 = vector.broadcast %214 : vector<1x64xf32> to vector<16x64xf32>
    %216 = arith.mulf %215, %84 : vector<16x64xf32>
    %217 = math.exp %216 : vector<16x64xf32>
    %218 = vector.extract_strided_slice %99 {offsets = [6, 0], sizes = [1, 64], strides = [1, 1]} : vector<8x64xf32> to vector<1x64xf32>
    %219 = vector.extract_strided_slice %95 {offsets = [0, 6], sizes = [16, 1], strides = [1, 1]} : vector<16x8xf32> to vector<16x1xf32>
    %220 = vector.broadcast %218 : vector<1x64xf32> to vector<16x64xf32>
    %221 = vector.broadcast %219 : vector<16x1xf32> to vector<16x64xf32>
    %222 = arith.mulf %220, %221 : vector<16x64xf32>
    %223 = arith.mulf %217, %205 : vector<16x64xf32>
    %224 = arith.addf %223, %222 : vector<16x64xf32>
    %225 = vector.extract_strided_slice %98 {offsets = [0, 6], sizes = [16, 1], strides = [1, 1]} : vector<16x8xf32> to vector<16x1xf32>
    %226 = vector.broadcast %225 : vector<16x1xf32> to vector<16x64xf32>
    %227 = arith.mulf %224, %226 : vector<16x64xf32>
    %cst_56 = arith.constant dense<0.000000e+00> : vector<64xf32>
    %228 = vector.multi_reduction <add>, %227, %cst_56 [0] : vector<16x64xf32> to vector<64xf32>
    %229 = vector.shape_cast %228 : vector<64xf32> to vector<1x64xf32>
    %230 = vector.extract_strided_slice %92 {offsets = [6, 0], sizes = [1, 64], strides = [1, 1]} : vector<8x64xf32> to vector<1x64xf32>
    %231 = arith.mulf %85, %230 : vector<1x64xf32>
    %232 = arith.addf %229, %231 : vector<1x64xf32>
    %233 = vector.extract_strided_slice %90 {offsets = [7, 0], sizes = [1, 64], strides = [1, 1]} : vector<8x64xf32> to vector<1x64xf32>
    %234 = vector.broadcast %233 : vector<1x64xf32> to vector<16x64xf32>
    %235 = arith.mulf %234, %84 : vector<16x64xf32>
    %236 = math.exp %235 : vector<16x64xf32>
    %237 = vector.extract_strided_slice %99 {offsets = [7, 0], sizes = [1, 64], strides = [1, 1]} : vector<8x64xf32> to vector<1x64xf32>
    %238 = vector.extract_strided_slice %95 {offsets = [0, 7], sizes = [16, 1], strides = [1, 1]} : vector<16x8xf32> to vector<16x1xf32>
    %239 = vector.broadcast %237 : vector<1x64xf32> to vector<16x64xf32>
    %240 = vector.broadcast %238 : vector<16x1xf32> to vector<16x64xf32>
    %241 = arith.mulf %239, %240 : vector<16x64xf32>
    %242 = arith.mulf %236, %224 : vector<16x64xf32>
    %243 = arith.addf %242, %241 : vector<16x64xf32>
    %244 = vector.extract_strided_slice %98 {offsets = [0, 7], sizes = [16, 1], strides = [1, 1]} : vector<16x8xf32> to vector<16x1xf32>
    %245 = vector.broadcast %244 : vector<16x1xf32> to vector<16x64xf32>
    %246 = arith.mulf %243, %245 : vector<16x64xf32>
    %cst_57 = arith.constant dense<0.000000e+00> : vector<64xf32>
    %247 = vector.multi_reduction <add>, %246, %cst_57 [0] : vector<16x64xf32> to vector<64xf32>
    %248 = vector.shape_cast %247 : vector<64xf32> to vector<1x64xf32>
    %249 = vector.extract_strided_slice %92 {offsets = [7, 0], sizes = [1, 64], strides = [1, 1]} : vector<8x64xf32> to vector<1x64xf32>
    %250 = arith.mulf %85, %249 : vector<1x64xf32>
    %251 = arith.addf %248, %250 : vector<1x64xf32>
    %252 = tpu.concatenate %118, %137, %156, %175, %194, %213, %232, %251 in 0 : vector<1x64xf32>, vector<1x64xf32>, vector<1x64xf32>, vector<1x64xf32>, vector<1x64xf32>, vector<1x64xf32>, vector<1x64xf32>, vector<1x64xf32> -> vector<8x64xf32>
    %253 = arith.index_cast %88 : i32 to index
    %c0_58 = arith.constant 0 : index
    %254 = vector.load %arg17[%253, %c0_58] : memref<8x64xf32, #tpu.memory_space<vmem>>, vector<8x64xf32>
    tpu.vector_store %arg17[%253, %c0_58], %252 {strides = array<i32>} : memref<8x64xf32, #tpu.memory_space<vmem>>, vector<8x64xf32>,
    %c1_i32 = arith.constant 1 : i32
    %c0_59 = arith.constant 0 : index
    %c0_60 = arith.constant 0 : index
    %255 = vector.load %arg17[%c0_59, %c0_60] : memref<8x64xf32, #tpu.memory_space<vmem>>, vector<8x64xf32>
    %cst_61 = arith.constant 0.000000e+00 : f32
    %256 = vector.broadcast %cst_61 : f32 to vector<8x64xf32>
    %257 = arith.subf %256, %21 : vector<8x64xf32>
    %258 = math.exp %257 : vector<8x64xf32>
    %cst_62 = arith.constant 1.000000e+00 : f32
    %259 = vector.broadcast %cst_62 : f32 to vector<8x64xf32>
    %260 = arith.addf %259, %258 : vector<8x64xf32>
    %cst_63 = arith.constant 1.000000e+00 : f32
    %261 = vector.broadcast %cst_63 : f32 to vector<8x64xf32>
    %262 = arith.divf %261, %260 : vector<8x64xf32>
    %263 = arith.mulf %21, %262 : vector<8x64xf32>
    %264 = arith.mulf %255, %263 : vector<8x64xf32>
    %265 = arith.truncf %264 : vector<8x64xf32> to vector<8x64xbf16>
    %c0_64 = arith.constant 0 : index
    %c0_65 = arith.constant 0 : index
    %266 = vector.load %arg11[%c0_64, %c0_65] : memref<64x32xbf16, #tpu.memory_space<vmem>>, vector<64x32xbf16>
    %cst_66 = arith.constant dense<0.000000e+00> : vector<8x32xf32>
    %267 = tpu.matmul %265, %266, %cst_66 {dimension_numbers = #tpu.dot_dimension_numbers<[1], [0], [0], [1], [0, 0, 1, 1], [], []>} : vector<8x64xbf16>, vector<64x32xbf16>, vector<8x32xf32> -> vector<8x32xf32>
    %268 = arith.addf %1, %267 : vector<8x32xf32>
    %c0_67 = arith.constant 0 : index
    %c0_68 = arith.constant 0 : index
    %c0_69 = arith.constant 0 : index
    %269 = vector.load %arg12[%c0_67, %c0_68, %c0_69] : memref<1x8x32xf32, #tpu.memory_space<vmem>>, vector<1x8x32xf32>
    %270 = vector.shape_cast %269 : vector<1x8x32xf32> to vector<8x32xf32>
    %271 = vector.shape_cast %268 : vector<8x32xf32> to vector<1x8x32xf32>
    tpu.vector_store %arg12[%c0_67, %c0_68, %c0_69], %271 {strides = array<i32>} : memref<1x8x32xf32, #tpu.memory_space<vmem>>, vector<1x8x32xf32>,
    return
  }
  func.func @transform_0(%arg0: i32) -> (i32, i32, i32) {
    %c0_i32 = arith.constant 0 : i32
    %c0_i32_0 = arith.constant 0 : i32
    %c0_i32_1 = arith.constant 0 : i32
    return %arg0, %c0_i32, %c0_i32_0 : i32, i32, i32
  }
  func.func @transform_1(%arg0: i32) -> (i32, i32) {
    %c0_i32 = arith.constant 0 : i32
    %c0_i32_0 = arith.constant 0 : i32
    %c0_i32_1 = arith.constant 0 : i32
    return %c0_i32, %c0_i32_0 : i32, i32
  }
  func.func @transform_2(%arg0: i32) -> (i32, i32) {
    %c0_i32 = arith.constant 0 : i32
    %c0_i32_0 = arith.constant 0 : i32
    %c0_i32_1 = arith.constant 0 : i32
    return %c0_i32, %c0_i32_0 : i32, i32
  }
  func.func @transform_3(%arg0: i32) -> (i32, i32) {
    %c0_i32 = arith.constant 0 : i32
    %c0_i32_0 = arith.constant 0 : i32
    %c0_i32_1 = arith.constant 0 : i32
    return %c0_i32, %c0_i32_0 : i32, i32
  }
  func.func @transform_4(%arg0: i32) -> (i32, i32) {
    %c0_i32 = arith.constant 0 : i32
    %c0_i32_0 = arith.constant 0 : i32
    %c0_i32_1 = arith.constant 0 : i32
    return %c0_i32, %c0_i32_0 : i32, i32
  }
  func.func @transform_5(%arg0: i32) -> (i32, i32) {
    %c0_i32 = arith.constant 0 : i32
    %c0_i32_0 = arith.constant 0 : i32
    %c0_i32_1 = arith.constant 0 : i32
    return %c0_i32, %c0_i32_0 : i32, i32
  }
  func.func @transform_6(%arg0: i32) -> (i32, i32) {
    %c0_i32 = arith.constant 0 : i32
    %c0_i32_0 = arith.constant 0 : i32
    %c0_i32_1 = arith.constant 0 : i32
    return %c0_i32, %c0_i32_0 : i32, i32
  }
  func.func @transform_7(%arg0: i32) -> (i32, i32) {
    %c0_i32 = arith.constant 0 : i32
    %c0_i32_0 = arith.constant 0 : i32
    %c0_i32_1 = arith.constant 0 : i32
    return %c0_i32, %c0_i32_0 : i32, i32
  }
  func.func @transform_8(%arg0: i32) -> (i32, i32) {
    %c0_i32 = arith.constant 0 : i32
    %c0_i32_0 = arith.constant 0 : i32
    %c0_i32_1 = arith.constant 0 : i32
    return %c0_i32, %c0_i32_0 : i32, i32
  }
  func.func @transform_9(%arg0: i32) -> (i32, i32) {
    %c0_i32 = arith.constant 0 : i32
    %c0_i32_0 = arith.constant 0 : i32
    %c0_i32_1 = arith.constant 0 : i32
    return %c0_i32, %c0_i32_0 : i32, i32
  }
  func.func @transform_10(%arg0: i32) -> (i32, i32) {
    %c0_i32 = arith.constant 0 : i32
    %c0_i32_0 = arith.constant 0 : i32
    %c0_i32_1 = arith.constant 0 : i32
    return %c0_i32, %c0_i32_0 : i32, i32
  }
  func.func @transform_11(%arg0: i32) -> (i32, i32, i32) {
    %c0_i32 = arith.constant 0 : i32
    %c0_i32_0 = arith.constant 0 : i32
    %c0_i32_1 = arith.constant 0 : i32
    return %arg0, %c0_i32, %c0_i32_0 : i32, i32, i32
  }
}

</mosaic_0001>

<bundles_post_ra>
// kernel: tpu_custom_call.1
= control target key start
LH: loop header
LB: loop body
LE: loop exit
PB: predicated region body
PF: predicated region fallthrough
CT: control target
= control target key end

     0   :  { %s2163_s0 = inlined_call_operand.vmem [shape: f32[2,8,32], index: 0, kind: input, shape index: {}]   ;;  %s2164_s1 = inlined_call_operand.vmem [shape: f32[1,32], index: 1, kind: input, shape index: {}]   ;;  %s2165_s2 = inlined_call_operand.vmem [shape: bf16[32,128], index: 2, kind: input, shape index: {}]   ;;  %s2166_s3 = inlined_call_operand.vmem [shape: f32[4,64], index: 3, kind: input, shape index: {}]   ;;  %s2167_s4 = inlined_call_operand.vmem [shape: f32[1,64], index: 4, kind: input, shape index: {}]   ;;  %s2168_s5 = inlined_call_operand.vmem [shape: bf16[64,34], index: 5, kind: input, shape index: {}]   ;;  %s2169_s6 = inlined_call_operand.vmem [shape: bf16[2,64], index: 6, kind: input, shape index: {}]   ;;  %s2170_s7 = inlined_call_operand.vmem [shape: f32[1,64], index: 7, kind: input, shape index: {}]   ;;  %s2171_s8 = inlined_call_operand.vmem [shape: f32[16,64], index: 8, kind: input, shape index: {}]   ;;  %s2172_s9 = inlined_call_operand.vmem [shape: f32[1,64], index: 9, kind: input, shape index: {}]   ;;  %s2173_s10 = inlined_call_operand.vmem [shape: bf16[64,32], index: 10, kind: input, shape index: {}]   ;;  %s2174_s11 = inlined_call_operand.hbm [shape: f32[2,8,32], index: 11, kind: output, shape index: {}]  }
   0x1   :  { %2175 = sst [smem:[#allocation10_spill]] %s2163_s0 }
   0x2   :  { %16 = vsyncpa [#allocation8], 0 }
   0x3   :  { %18 = vsyncpa [#allocation8 + $0x1], 0  ;;  %s1757_s17 = smov 0   ;;  %s1759_s18 = smov 0  }
   0x4   :  { %s1761_s19 = smov 0   ;;  %s1763_s20 = smov 0  }
   0x5 LB: > { %s1778_s21 = sadd.s32 4294967295, %s1680_s20   ;;  %s1393_s22 = sadd.s32 4294967294, %s1680_s20   ;;  %s1680_s20 = sphi %s1763_s20, %s2182_s20   ;;  %s1676_s19 = sphi %s1761_s19, %s2181_s19   ;;  %s1672_s18 = sphi %s1759_s18, %s2180_s18   ;;  %s1668_s17 = sphi %s1757_s17, %s2179_s17  }
   0x6   : > { %s1782_s23 = sadd.s32 1, %s1680_s20   ;;  %s267_s24 = sadd.s32 1, %s1676_s19 }
   0x7   : > { %s264_s25 = ssub.s32 %s1680_s20, %s1782_s23  ;;  %p277_p0 = scmp.ne.s32.totalorder %s1676_s19, %s1672_s18 }
   0x8   : > { %p265_p1 = scmp.eq.s32.totalorder %s264_s25, 0  ;;  %p278_p2 = scmp.eq.s32.totalorder %s1778_s21, 1 }
   0x9   : > { %p283_p3 = scmp.ne.s32.totalorder %s1672_s18, %s1668_s17  ;;  %p284_p4 = scmp.eq.s32.totalorder %s1393_s22, 1 }
   0xa   : > { %s1793_s26 = scalar_select %p265_p1, %s1676_s19, %s267_s24  }
   0xb   : > { %p1795_p5 = por %p278_p2, %p277_p0  ;;  %p1799_p6 = por %p284_p4, %p283_p3 }
   0xc   : > { %p1396_p7 = scmp.ge.s32.totalorder %s1680_s20, 1  ;;  %p339_p8 = scmp.lt.s32.totalorder %s1680_s20, 3 }
   0xe   : > { %p340_p9 = pnand %p1396_p7, %p339_p8 }
   0xf   : > { %p378_p10 = scmp.lt.s32.totalorder (!%p340_p9), %s1778_s21, 1  ;;  %s2178_s0 = sld [smem:[#allocation10_spill]] (!%p340_p9) }
  0x10   : > { %343 = sbr.rel (%p340_p9) target bundleno = 1352 (0x548), region = 64  ;;  %s1684_s13 = smov (!%p340_p9), 110  }
  0x11   : > { %s1685_s15 = smov (!%p340_p9), 126   ;;  %s1694_s24 = smov (!%p340_p9), 64  }
  0x12   : > { %s1421_s22 = sshll.u32 (!%p340_p9), %s1778_s21, 7 }
  0x13   : > { %s2121_s12 = scalar_lea.hbm (!%p340_p9), %s2174_s11, %s1421_s22 }
  0x15   : > { %s379_s29 = scalar_select %p378_p10, %s1778_s21, 1  ;;  %vm385_vm0 = vcmask 261120   ;;  %v1562_v3 = vld [vmem:[%s2165_s2 + $0x8] sm:$0xff]   ;;  %v1682_v4 = vmov 0.0   ;;  %vm1683_vm1 = vmmov 0   ;;  %v1563_v5 = vld [vmem:[%s2165_s2] sm:$0xff]  }
  0x16   : > { %1439 = vmatprep.subr.bf16.mxu1 %v1682_v4  ;;  %1443 = vmatprep.mubr.msk.bf16.mxu1 %vm1683_vm1, %v1682_v4  ;;  %v1399_v10 = vld [vmem:[%s2164_s1] ss:$0 sm:$0xff]  ;;  %v1564_v14 = vld [vmem:[%s2168_s5 + $0x18] sm:$0xff]   ;;  %v1565_v15 = vld [vmem:[%s2168_s5 + $0x10] sm:$0xff]   ;;  %vm472_vm2 = vcmask 1042432   ;;  %vm483_vm3 = vcmask 1041408  }
  0x17   : > { %s1398_s30 = sshll.u32 %s379_s29, 3  ;;  %1440 = vmatpush3.bf16.msra.mxu1 %v1562_v3  ;;  %1459 = vmatprep.subr.bf16.mxu0 %v1682_v4  ;;  %v1566_v16 = vld [vmem:[%s2168_s5 + $0x8] sm:$0xff]   ;;  %v1567_v17 = vld [vmem:[%s2168_s5] sm:$0xff]   ;;  %vm494_vm4 = vcmask 1040384   ;;  %vm550_vm5 = vcmask 523264   ;;  %vm603_vm6 = vcmask 15360  }
  0x18   : > { %s1810_s14 = scalar_lea.vmem %s2178_s0, %s1398_s30  ;;  %1441 = vmatprep.subr.bf16.mxu1 %v1682_v4  ;;  %1461 = vmatprep.mubr.msk.bf16.mxu0 %vm1683_vm1, %v1682_v4  ;;  %v1404_v20 = vld [vmem:[%s2166_s3] ss:$0 sm:$0xff]  ;;  %v1405_v27 = vld [vmem:[%s2166_s3 + $0x1] ss:$0 sm:$0xff]  ;;  %v1406_v31 = vld [vmem:[%s2166_s3 + $0x2] ss:$0 sm:$0xff] }
  0x19   : > { %v383_v0 = vld [vmem:[%s1810_s14] sm:$0xff]  ;;  %vm665_vm7 = vcmask 130048   ;;  %v1686_v59 = vmov 0   ;;  %v1687_v60 = vmov 4   ;;  %vm1220_vm8 = vcmask 1043456  }
  0x1a   : > { %v384_v1 = vmul.f32 %v383_v0, %v383_v0  ;;  %v1403_v24 = vld [vmem:[%s2167_s4] ss:$0 sm:$0xff]  ;;  %v1407_v35 = vld [vmem:[%s2166_s3 + $0x3] ss:$0 sm:$0xff]  ;;  %vm1222_vm9 = vcmask 1044480   ;;  %vm1224_vm10 = vcmask 1045504  }
  0x1b   : > { %1442 = vmatpush3.bf16.msra.mxu1 %v1563_v5  ;;  %v595_v48 = vld [vmem:[%s2169_s6] sm:$0x1]  ;;  %vm1226_vm11 = vcmask 1046528  }
  0x1c   : > { %v386_v2 = vsel %vm385_vm0, %v384_v1, 0.0  ;;  %1447 = vmatprep.subr.bf16.mxu1 %v1682_v4  ;;  %v608_v49 = vsel %vm494_vm4, %v595_v48, 0  ;;  %v1413_v61 = vld [vmem:[%s2170_s7] ss:$0 sm:$0xff]  ;;  %v1946_v48 = vld [vmem:[%s2171_s8 + $0x8] sm:$0xff] }
  0x1d   : > { %387 = vadd.xlane.f32.xlu0 %v386_v2  ;;  %1460 = vmatpush3.bf16.msra.mxu0 %v608_v49 }
  0x1e   : > { %1465 = vmatprep.subr.bf16.mxu0 %v1682_v4 }
  0xa6   : > { %v388_v6 = vpop.xlane.xlu0 %387 }
  0xa7   : > { %v390_v7 = vmul.f32 0.03125, %v388_v6 }
  0xa9   : > { %v391_v8 = vadd.f32 1e-05, %v390_v7 }
  0xab   : > { %1573 = vrsqrt.f32 %v391_v8 }
  0xb8   : > { %v1574_v9 = vpop.eup %1573 }
  0xb9   : > { %v393_v11 = vmul.f32 %v1574_v9, %v383_v0 }
  0xbb   : > { %v401_v12 = vmul.f32 %v1399_v10, %v393_v11 }
  0xbd   : > { %v402_v13 = vpack.c.bf16 %v401_v12, %v401_v12 }
  0xbf   : > { %1444 = vmatmul.mubr.msk.bf16.vlgmr.msra.gmra.mxu1 %vm385_vm0, %v402_v13 }
  0xc0   : > { %1455 = vmatprep.mubr.msk.bf16.mxu1 %vm1683_vm1, %v1682_v4  ;;  %1448 = vmatpush3.bf16.msra.mxu1 %v1564_v14 }
  0xc1   : > { %1449 = vmatprep.subr.bf16.mxu1 %v1682_v4 }
  0xc4   : > { %1450 = vmatpush3.bf16.msra.mxu1 %v1565_v15 }
  0xc5   : > { %1451 = vmatprep.subr.bf16.mxu1 %v1682_v4 }
  0xc8   : > { %1452 = vmatpush3.bf16.msra.mxu1 %v1566_v16 }
  0xc9   : > { %1453 = vmatprep.subr.bf16.mxu1 %v1682_v4 }
  0xcc   : > { %1454 = vmatpush3.bf16.msra.mxu1 %v1567_v17  ;;  %v1688_v17 = vmov 1  }
 0x17f   : > { %v1849_v18 = vpop.f32.mrf.mxu1 }
 0x180   : > { %v470_v19 = vrot.slane %v1849_v18, 5  ;;  %v481_v21 = vrot.slane %v1849_v18, 6  ;;  %v492_v22 = vrot.slane %v1849_v18, 7  ;;  %v508_v39 = vmul.f32 %v1407_v35, %v1849_v18 }
 0x181   : > { %v1445_v23 = vpop.f32.mrf.mxu1  ;;  %v1230_v13 = vsub.f32 0.0, %v1849_v18 }
 0x182   : > { %v473_v25 = vsel %vm472_vm2, 0.0, %v470_v19  ;;  %v484_v26 = vsel %vm483_vm3, 0.0, %v481_v21  ;;  %v495_v30 = vsel %vm494_vm4, 0.0, %v492_v22  ;;  %v1689_v19 = vmov 2  }
 0x183   : > { %v479_v28 = vmul.f32 %v1404_v20, %v473_v25  ;;  %v459_v29 = vpop.f32.mrf.mxu1  ;;  %v490_v33 = vmul.f32 %v1405_v27, %v484_v26  ;;  %v501_v37 = vmul.f32 %v1406_v31, %v495_v30  ;;  %v1231_v15 = vmul.f32 1.442695, %v1230_v13  ;;  %v1569_v31 = vld [vmem:[%s2173_s10 + $0x18] sm:$0xff]  }
 0x184   : > { %v1690_v20 = vmov 3   ;;  %v1691_v21 = vmov 5   ;;  %v1692_v25 = vmov 6   ;;  %v1693_v27 = vmov 7  }
 0x185   : > { %v480_v32 = vadd.f32 %v1403_v24, %v479_v28  ;;  %v1446_v34 = vpop.f32.mrf.mxu1  ;;  %v743_v30 = vlaneseq }
 0x186   : > { %v1570_v34 = vld [vmem:[%s2173_s10 + $0x10] sm:$0xff]  }
 0x187   : > { %v491_v36 = vadd.f32 %v490_v33, %v480_v32  ;;  %v1909_v32 = vshrl.u32 %v743_v30, 7 }
 0x189   : > { %v502_v38 = vadd.f32 %v501_v37, %v491_v36  ;;  %v745_v35 = vsub.s32 0, %v1909_v32 }
 0x18b   : > { %v509_v40 = vadd.f32 %v508_v39, %v502_v38  ;;  %v1571_v38 = vld [vmem:[%s2173_s10 + $0x8] sm:$0xff]  }
 0x18d   : > { %v510_v41 = vsub.f32 0.0, %v509_v40 }
 0x18f   : > { %v511_v42 = vmul.f32 1.442695, %v510_v41  ;;  %v1572_v41 = vld [vmem:[%s2173_s10] sm:$0xff]  }
 0x191   : > { %1575 = vpow2.f32 %v511_v42 }
 0x19e   : > { %v1576_v43 = vpop.eup %1575 }
 0x19f   : > { %v513_v44 = vadd.f32 1.0, %v1576_v43  ;;  %v798_v43 = vsub.s32 1, %v1909_v32 }
 0x1a1   : > { %1577 = vrcp.f32 %v513_v44 }
 0x1ae   : > { %v1578_v45 = vpop.eup %1577 }
 0x1af   : > { %v516_v46 = vmul.f32 %v1578_v45, %v509_v40  ;;  %v1930_v40 = vld [vmem:[%s2171_s8] sm:$0xff] }
 0x1b1   : > { %v517_v47 = vpack.c.bf16 %v516_v46, %v516_v46  ;;  %660 = vst.msk [vmem:[#allocation3] sm:$0xff] %vm550_vm5, %v516_v46 }
 0x1b3   : > { %1456 = vmatmul.mubr.msk.bf16.vlgmr.msra.gmra.mxu1 %vm550_vm5, %v517_v47 }
 0x273   : > { %v588_v50 = vpop.f32.mrf.mxu1 }
 0x274   : > { %v594_v51 = vpack.c.bf16 %v588_v50, %v588_v50  ;;  %667 = vrot.lane.b32.xlu1 %v588_v50, %s1684_s13  ;;  %662 = vrot.lane.b32.xlu0 %v588_v50, %s1685_s15  ;;  %s375_s15 = sand.u32 1, %s1672_s18  }
 0x275   : > { %v1457_v52 = vpop.f32.mrf.mxu1  ;;  %s1397_s16 = sshll.u32 %s375_s15, 3  ;;  %s1321_s21 = scalar_lea.sflag [#allocation8], %s375_s15 }
 0x276   : > { %1462 = vmatmul.mubr.msk.bf16.vlgmr.msra.gmra.mxu0 %vm603_vm6, %v594_v51  ;;  %v871_v51 = vsub.s32 2, %v1909_v32 }
 0x277   : > { %v591_v53 = vpop.f32.mrf.mxu1  ;;  %1473 = vmatprep.mubr.msk.bf16.mxu0 %vm1683_vm1, %v1682_v4  ;;  %1466 = vmatpush3.bf16.msra.mxu0 %v1569_v31 }
 0x278   : > { %1467 = vmatprep.subr.bf16.mxu0 %v1682_v4 }
 0x279   : > { %v1458_v54 = vpop.f32.mrf.mxu1 }
 0x27b   : > { %1468 = vmatpush3.bf16.msra.mxu0 %v1570_v34 }
 0x27c   : > { %1469 = vmatprep.subr.bf16.mxu0 %v1682_v4 }
 0x27f   : > { %1470 = vmatpush3.bf16.msra.mxu0 %v1571_v38 }
 0x280   : > { %1471 = vmatprep.subr.bf16.mxu0 %v1682_v4 }
 0x283   : > { %1472 = vmatpush3.bf16.msra.mxu0 %v1572_v41  ;;  %v1096_v41 = vsub.s32 6, %v1909_v32 }
 0x2e6   : > { %v668_v55 = vpop.permute.xlu1 %667  ;;  %v663_v56 = vpop.permute.xlu0 %662 }
 0x2e7   : > { %670 = vst.msk [vmem:[#allocation5] sm:$0xff] %vm665_vm7, %v668_v55  ;;  %666 = vst.msk [vmem:[#allocation4] sm:$0xff] %vm665_vm7, %v663_v56  ;;  %v1958_v56 = vld [vmem:[#allocation3] sm:$0xff] }
 0x2ee   : > { %v709_v57 = vld [vmem:[#allocation5] sm:$0xff]  ;;  %v676_v58 = vld [vmem:[#allocation4] sm:$0xff] }
 0x2ef   : > { %710 = vxpose.xlu0.b32.start.end [1/1] (short) (narrow) %v709_v57, 16  ;;  %677 = vxpose.xlu1.b32.start.end [1/1] (short) (narrow) %v676_v58, 16 }
 0x30d   : > { %1530 = vset.pattern.permute.xlu1 %v1686_v59 }
 0x318   : > { %1534 = vset.pattern.permute.xlu0 %v1687_v60 }
 0x336   : > { %v644_v62 = vpop.f32.mrf.mxu0 }
 0x337   : > { %v645_v63 = vadd.f32 %v1413_v61, %v644_v62  ;;  %v922_v61 = vsub.s32 3, %v1909_v32 }
 0x338   : > { %v1463_v0 = vpop.f32.mrf.mxu0 }
 0x339   : > { %v651_v1 = vand.u32 2147483647, %v645_v63  ;;  %v650_v10 = vmax.f32 %v645_v63, 0.0 }
 0x33a   : > { %v647_v2 = vpop.f32.mrf.mxu0 }
 0x33b   : > { %v652_v3 = vsub.f32 0.0, %v651_v1 }
 0x33c   : > { %v1464_v5 = vpop.f32.mrf.mxu0 }
 0x33d   : > { %v653_v6 = vmul.f32 1.442695, %v652_v3 }
 0x33f   : > { %1579 = vpow2.f32 %v653_v6 }
 0x34c   : > { %v1580_v7 = vpop.eup %1579 }
 0x34d   : > { %v655_v8 = vadd.f32 1.0, %v1580_v7 }
 0x34f   : > { %1581 = vlog2.f32 %v655_v8 }
 0x350   : > { %1583 = vpow2.f32 %v1231_v15 }
 0x35c   : > { %v1582_v9 = vpop.eup %1581 }
 0x35d   : > { %v657_v11 = vmul.f32 0.6931472, %v1582_v9  ;;  %v1584_v23 = vpop.eup %1583 }
 0x35e   : > { %v1233_v24 = vadd.f32 1.0, %v1584_v23 }
 0x35f   : > { %v658_v12 = vadd.f32 %v657_v11, %v650_v10  ;;  %v973_v10 = vsub.s32 4, %v1909_v32 }
 0x360   : > { %1585 = vrcp.f32 %v1233_v24  ;;  %v1038_v24 = vsub.s32 5, %v1909_v32 }
 0x361   : > { %659 = vst.msk [vmem:[#allocation2] sm:$0xff] %vm550_vm5, %v658_v12 }
 0x368   : > { %v1918_v36 = vld [vmem:[#allocation2] sm:$0xff] }
 0x369   : > { %v746_v39 = vrot.slane %v1918_v36, %v745_v35  ;;  %v799_v46 = vrot.slane %v1918_v36, %v798_v43  ;;  %v872_v55 = vrot.slane %v1918_v36, %v871_v51  ;;  %v923_v2 = vrot.slane %v1918_v36, %v922_v61 }
 0x36b   : > { %v693_v14 = vpop.trf.xlu1  ;;  %v1889_v16 = vpop.trf.xlu0  ;;  %v747_v42 = vmul.f32 %v746_v39, %v1930_v40  ;;  %v800_v50 = vmul.f32 %v799_v46, %v1930_v40  ;;  %v748_v4 = vmul.f32 %v746_v39, %v1946_v48  ;;  %v801_v63 = vmul.f32 %v799_v46, %v1946_v48 }
 0x36c   : > { %986 = vperm.xlu0 %1534, %v693_v14   ;;  %759 = vperm.xlu1 %1530, %v693_v14   ;;  %v874_v8 = vmul.f32 %v872_v55, %v1946_v48  ;;  %v924_v11 = vmul.f32 %v923_v2, %v1930_v40 }
 0x36d   : > { %v1586_v28 = vpop.eup %1585  ;;  %v749_v45 = vmul.f32 1.442695, %v747_v42  ;;  %v802_v53 = vmul.f32 1.442695, %v800_v50  ;;  %v751_v57 = vmul.f32 1.442695, %v748_v4 }
 0x36e   : > { %v1236_v29 = vmul.f32 %v1586_v28, %v1849_v18  ;;  %v804_v7 = vmul.f32 1.442695, %v801_v63  ;;  %v877_v15 = vmul.f32 1.442695, %v874_v8 }
 0x36f   : > { %v694_v22 = vpop.trf.xlu1  ;;  %v727_v26 = vpop.trf.xlu0  ;;  %1587 = vpow2.f32 %v749_v45 }
 0x370   : > { %1537 = vset.pattern.permute.xlu0 %v1688_v17  ;;  %1531 = vset.pattern.permute.xlu1 %v1688_v17  ;;  %1589 = vpow2.f32 %v802_v53 }
 0x371   : > { %811 = vperm.xlu1 %1531, %v693_v14   ;;  %825 = vperm.xlu0 %1537, %v1889_v16   ;;  %1591 = vpow2.f32 %v751_v57 }
 0x375   : > { %1532 = vset.pattern.permute.xlu1 %v1689_v19  ;;  %1540 = vset.pattern.permute.xlu0 %v1690_v20 }
 0x376   : > { %884 = vperm.xlu1 %1532, %v693_v14   ;;  %949 = vperm.xlu0 %1540, %v1889_v16  }
 0x37a   : > { %1533 = vset.pattern.permute.xlu1 %v1690_v20  ;;  %1543 = vset.pattern.permute.xlu0 %v1691_v21 }
 0x37b   : > { %935 = vperm.xlu1 %1533, %v693_v14   ;;  %1065 = vperm.xlu0 %1543, %v1889_v16  }
 0x37c   : > { %v1588_v5 = vpop.eup %1587 }
 0x37d   : > { %v769_v9 = vmul.f32 0.0, %v1588_v5 }
 0x37f   : > { %1535 = vset.pattern.permute.xlu1 %v1691_v21  ;;  %1545 = vset.pattern.permute.xlu0 %v1686_v59 }
 0x380   : > { %1051 = vperm.xlu1 %1535, %v693_v14   ;;  %764 = vperm.xlu0 %1545, %v694_v22  }
 0x384   : > { %1536 = vset.pattern.permute.xlu1 %v1692_v25  ;;  %1550 = vset.pattern.permute.xlu0 %v1691_v21 }
 0x385   : > { %1109 = vperm.xlu1 %1536, %v693_v14   ;;  %1055 = vperm.xlu0 %1550, %v694_v22  }
 0x389   : > { %1538 = vset.pattern.permute.xlu1 %v1689_v19  ;;  %1553 = vset.pattern.permute.xlu0 %v1689_v19 }
 0x38a   : > { %898 = vperm.xlu1 %1538, %v1889_v16   ;;  %902 = vperm.xlu0 %1553, %v727_v26  }
 0x38e   : > { %1539 = vset.pattern.permute.xlu1 %v1686_v59  ;;  %1556 = vset.pattern.permute.xlu0 %v1693_v27 }
 0x38f   : > { %775 = vperm.xlu1 %1539, %v1889_v16   ;;  %1164 = vperm.xlu0 %1556, %v694_v22  }
 0x393   : > { %1541 = vset.pattern.permute.xlu1 %v1693_v27  ;;  %1559 = vset.pattern.permute.xlu0 %v1692_v25 }
 0x394   : > { %1160 = vperm.xlu1 %1541, %v693_v14   ;;  %1127 = vperm.xlu0 %1559, %v727_v26  }
 0x398   : > { %1542 = vset.pattern.permute.xlu1 %v1687_v60  ;;  %1238 = vrot.lane.b32.xlu0 %v1236_v29, %s1694_s24  ;;  %s377_s24 = scalar_lea.vmem [#allocation7], %s1397_s16 }
 0x399   : > { %1000 = vperm.xlu1 %1542, %v1889_v16   ;;  %1561 = vset.pattern.permute.xlu0 %v1693_v27  ;;  %s1334_s25 = sshll.u32 %s377_s24, 4  ;;  %s2123_s25 = int_to_ptr.vmem [resolvable:$true] %s1334_s25 }
 0x39a   : > { %s1620_s13 = scalar_lea.vmem %s2123_s25, 128 }
 0x39b   : > { %p1621_p11 = scmp.ne.s32.totalorder %s2123_s25, %s1620_s13 }
 0x39d   : > { %1544 = vset.pattern.permute.xlu1 %v1692_v25  ;;  %p1622_p12 = pnand %p1621_p11, %p1795_p5 }
 0x39e   : > { %1123 = vperm.xlu1 %1544, %v1889_v16  }
 0x39f   : > { %p1623_p13 = pneg %p1622_p12 }
 0x3a2   : > { %1546 = vset.pattern.permute.xlu1 %v1688_v17 }
 0x3a3   : > { %815 = vperm.xlu1 %1546, %v694_v22  }
 0x3a7   : > { %1547 = vset.pattern.permute.xlu1 %v1689_v19  ;;  %v925_v19 = vmul.f32 %v923_v2, %v1946_v48 }
 0x3a8   : > { %888 = vperm.xlu1 %1547, %v694_v22  }
 0x3a9   : > { %v928_v29 = vmul.f32 1.442695, %v925_v19 }
 0x3ac   : > { %1548 = vset.pattern.permute.xlu1 %v1690_v20 }
 0x3ad   : > { %939 = vperm.xlu1 %1548, %v694_v22  }
 0x3b1   : > { %1549 = vset.pattern.permute.xlu1 %v1687_v60 }
 0x3b2   : > { %990 = vperm.xlu1 %1549, %v694_v22  }
 0x3b6   : > { %1551 = vset.pattern.permute.xlu1 %v1692_v25 }
 0x3b7   : > { %1113 = vperm.xlu1 %1551, %v694_v22  }
 0x3bb   : > { %1552 = vset.pattern.permute.xlu1 %v1688_v17 }
 0x3bc   : > { %829 = vperm.xlu1 %1552, %v727_v26  }
 0x3c0   : > { %1554 = vset.pattern.permute.xlu1 %v1686_v59  ;;  %v1964_v59 = vmul.f32 %v1958_v56, %v1918_v36 }
 0x3c1   : > { %780 = vperm.xlu1 %1554, %v727_v26  }
 0x3c2   : > { %v756_v0 = vrot.slane %v1964_v59, %v745_v35  ;;  %v809_v17 = vrot.slane %v1964_v59, %v798_v43  ;;  %v882_v39 = vrot.slane %v1964_v59, %v871_v51  ;;  %v1097_v51 = vrot.slane %v1918_v36, %v1096_v41 }
 0x3c3   : > { %v933_v5 = vrot.slane %v1964_v59, %v922_v61 }
 0x3c4   : > { %v1098_v19 = vmul.f32 %v1097_v51, %v1930_v40 }
 0x3c5   : > { %1555 = vset.pattern.permute.xlu1 %v1690_v20  ;;  %v926_v20 = vmul.f32 1.442695, %v924_v11 }
 0x3c6   : > { %953 = vperm.xlu1 %1555, %v727_v26  }
 0x3ca   : > { %1557 = vset.pattern.permute.xlu1 %v1687_v60  ;;  %v873_v60 = vmul.f32 %v872_v55, %v1930_v40 }
 0x3cb   : > { %1004 = vperm.xlu1 %1557, %v727_v26  }
 0x3cc   : > { %v875_v1 = vmul.f32 1.442695, %v873_v60 }
 0x3ce   : > { %1593 = vpow2.f32 %v875_v1 }
 0x3cf   : > { %1558 = vset.pattern.permute.xlu1 %v1691_v21  ;;  %1595 = vpow2.f32 %v804_v7  ;;  %v1590_v21 = vpop.eup %1589  ;;  %v1099_v7 = vmul.f32 %v1097_v51, %v1946_v48 }
 0x3d0   : > { %1069 = vperm.xlu1 %1558, %v727_v26   ;;  %1597 = vpow2.f32 %v877_v15 }
 0x3d1   : > { %1599 = vpow2.f32 %v926_v20  ;;  %v1102_v20 = vmul.f32 1.442695, %v1099_v7 }
 0x3d2   : > { %1601 = vpow2.f32 %v928_v29 }
 0x3d4   : > { %1560 = vset.pattern.permute.xlu1 %v1693_v27  ;;  %v1592_v27 = vpop.eup %1591 }
 0x3d5   : > { %1174 = vperm.xlu1 %1560, %v1889_v16   ;;  %v974_v16 = vrot.slane %v1918_v36, %v973_v10  ;;  %v770_v34 = vmul.f32 0.0, %v1592_v27 }
 0x3d7   : > { %v975_v28 = vmul.f32 %v974_v16, %v1930_v40 }
 0x3d9   : > { %1178 = vperm.xlu1 %1560, %v727_v26   ;;  %v977_v38 = vmul.f32 1.442695, %v975_v28  ;;  %v1100_v28 = vmul.f32 1.442695, %v1098_v19 }
 0x3db   : > { %v1594_v42 = vpop.eup %1593  ;;  %1603 = vpow2.f32 %v977_v38 }
 0x3dc   : > { %v1596_v53 = vpop.eup %1595 }
 0x3dd   : > { %v1598_v2 = vpop.eup %1597 }
 0x3de   : > { %v1600_v8 = vpop.eup %1599 }
 0x3e7   : > { %v760_v18 = vpop.permute.xlu1 %759  ;;  %v1948_v49 = vpop.permute.xlu0 %986 }
 0x3e8   : > { %v767_v6 = vmul.f32 %v760_v18, %v756_v0  ;;  %v976_v18 = vmul.f32 %v974_v16, %v1946_v48 }
 0x3ea   : > { %v1984_v14 = vadd.f32 %v769_v9, %v767_v6  ;;  %v979_v43 = vmul.f32 1.442695, %v976_v18 }
 0x3ec   : > { %v1911_v33 = vpop.permute.xlu1 %811  ;;  %v1955_v54 = vpop.permute.xlu0 %825  ;;  %v820_v23 = vmul.f32 %v1590_v21, %v1984_v14  ;;  %1605 = vpow2.f32 %v979_v43 }
 0x3ed   : > { %v818_v22 = vmul.f32 %v1911_v33, %v809_v17  ;;  %v1039_v33 = vrot.slane %v1918_v36, %v1038_v24 }
 0x3ef   : > { %v1998_v31 = vadd.f32 %v820_v23, %v818_v22  ;;  %v1041_v4 = vmul.f32 %v1039_v33, %v1946_v48  ;;  %v1040_v55 = vmul.f32 %v1039_v33, %v1930_v40  ;;  %v1602_v22 = vpop.eup %1601 }
 0x3f0   : > { %v1604_v29 = vpop.eup %1603 }
 0x3f1   : > { %v1920_v37 = vpop.permute.xlu1 %884  ;;  %v1968_v62 = vpop.permute.xlu0 %949  ;;  %v893_v50 = vmul.f32 %v1594_v42, %v1998_v31  ;;  %v1042_v6 = vmul.f32 1.442695, %v1040_v55 }
 0x3f2   : > { %v891_v46 = vmul.f32 %v1920_v37, %v882_v39  ;;  %v1044_v37 = vmul.f32 1.442695, %v1041_v4  ;;  %v1049_v4 = vrot.slane %v1964_v59, %v1038_v24 }
 0x3f4   : > { %1607 = vpow2.f32 %v1044_v37 }
 0x3f5   : > { %1609 = vpow2.f32 %v1042_v6 }
 0x3f6   : > { %v1937_v44 = vpop.permute.xlu1 %935  ;;  %v1980_v12 = vpop.permute.xlu0 %1065  ;;  %1611 = vpow2.f32 %v1102_v20 }
 0x3f7   : > { %v942_v15 = vmul.f32 %v1937_v44, %v933_v5  ;;  %1613 = vpow2.f32 %v1100_v28 }
 0x3f9   : > { %v1606_v44 = vpop.eup %1605 }
 0x3fb   : > { %v1941_v47 = vpop.permute.xlu1 %1051  ;;  %v765_v25 = vpop.permute.xlu0 %764 }
 0x3fc   : > { %v768_v30 = vmul.f32 %v765_v25, %v756_v0  ;;  %v2017_v0 = vadd.f32 %v893_v50, %v891_v46  ;;  %v1147_v46 = vsub.s32 7, %v1909_v32 }
 0x3fe   : > { %v2007_v45 = vadd.f32 %v770_v34, %v768_v30  ;;  %v944_v16 = vmul.f32 %v1600_v8, %v2017_v0  ;;  %v984_v30 = vrot.slane %v1964_v59, %v973_v10 }
 0x400   : > { %v1952_v52 = vpop.permute.xlu1 %1109  ;;  %v821_v63 = vmul.f32 %v1596_v53, %v2007_v45  ;;  %v946_v23 = vadd.f32 %v944_v16, %v942_v15  ;;  %v1056_v43 = vpop.permute.xlu0 %1055 }
 0x401   : > { %v1608_v55 = vpop.eup %1607  ;;  %v1059_v10 = vmul.f32 %v1056_v43, %v1049_v4 }
 0x402   : > { %v995_v33 = vmul.f32 %v1604_v29, %v946_v23 }
 0x405   : > { %v1960_v58 = vpop.permute.xlu1 %898 }
 0x40a   : > { %v1975_v3 = vpop.permute.xlu1 %775 }
 0x40f   : > { %v1982_v13 = vpop.permute.xlu1 %1160 }
 0x414   : > { %v1994_v26 = vpop.permute.xlu1 %1000 }
 0x419   : > { %v2003_v35 = vpop.permute.xlu1 %1123 }
 0x41e   : > { %v816_v57 = vpop.permute.xlu1 %815 }
 0x41f   : > { %v819_v60 = vmul.f32 %v816_v57, %v809_v17 }
 0x421   : > { %v823_v1 = vadd.f32 %v821_v63, %v819_v60  ;;  %v1610_v60 = vpop.eup %1609  ;;  %v903_v63 = vpop.permute.xlu0 %902 }
 0x422   : > { %v1612_v6 = vpop.eup %1611 }
 0x423   : > { %v889_v9 = vpop.permute.xlu1 %888  ;;  %v894_v11 = vmul.f32 %v1598_v2, %v823_v1 }
 0x424   : > { %v892_v17 = vmul.f32 %v889_v9, %v882_v39  ;;  %v993_v39 = vmul.f32 %v1948_v49, %v984_v30  ;;  %v1148_v49 = vrot.slane %v1918_v36, %v1147_v46  ;;  %v1107_v9 = vrot.slane %v1964_v59, %v1096_v41 }
 0x425   : > { %v832_v36 = vmul.f32 %v1955_v54, %v1998_v31  ;;  %v2053_v16 = vpop.permute.xlu0 %1164 }
 0x426   : > { %v896_v21 = vadd.f32 %v894_v11, %v892_v17  ;;  %v997_v50 = vadd.f32 %v995_v33, %v993_v39  ;;  %v1149_v24 = vmul.f32 %v1148_v49, %v1930_v40  ;;  %v1150_v17 = vmul.f32 %v1148_v49, %v1946_v48 }
 0x427   : > { %v834_v48 = vsel %vm550_vm5, %v832_v36, 0.0  ;;  %v1116_v29 = vmul.f32 %v1952_v52, %v1107_v9 }
 0x428   : > { %v940_v61 = vpop.permute.xlu1 %939  ;;  %v945_v25 = vmul.f32 %v1602_v22, %v896_v21  ;;  %v1060_v37 = vmul.f32 %v1610_v60, %v997_v50  ;;  %v906_v20 = vmul.f32 %v903_v63, %v896_v21  ;;  %v1614_v22 = vpop.eup %1613  ;;  %v1153_v28 = vmul.f32 1.442695, %v1150_v17 }
 0x429   : > { %v943_v27 = vmul.f32 %v940_v61, %v933_v5  ;;  %v1058_v5 = vmul.f32 %v1941_v47, %v1049_v4  ;;  %v1695_v47 = vmov 1966171168   ;;  %v783_v61 = vmul.f32 %v1975_v3, %v1984_v14 }
 0x42a   : > { %v845_v19 = vunpack.c.l.s4 %v1695_v47  ;;  %v908_v3 = vsel %vm550_vm5, %v906_v20, 0.0  ;;  %v1007_v60 = vmul.f32 %v1994_v26, %v997_v50 }
 0x42b   : > { %v2026_v18 = vadd.f32 %v945_v25, %v943_v27  ;;  %v1062_v8 = vadd.f32 %v1060_v37, %v1058_v5  ;;  %v1151_v25 = vmul.f32 1.442695, %v1149_v24  ;;  %v785_v33 = vsel %vm550_vm5, %v783_v61, 0.0 }
 0x42d   : > { %v991_v34 = vpop.permute.xlu1 %990  ;;  %v996_v38 = vmul.f32 %v1606_v44, %v2026_v18  ;;  %v1118_v27 = vmul.f32 %v1614_v22, %v1062_v8  ;;  %v846_v44 = vunpack.c.0.s8 %v845_v19  ;;  %1615 = vpow2.f32 %v1151_v25 }
 0x42e   : > { %v994_v42 = vmul.f32 %v991_v34, %v984_v30  ;;  %v956_v30 = vmul.f32 %v1968_v62, %v946_v23  ;;  %1617 = vpow2.f32 %v1153_v28  ;;  %v1072_v50 = vmul.f32 %v1980_v12, %v1062_v8 }
 0x42f   : > { %v2075_v23 = vsub.s32 %v846_v44, %v1909_v32  ;;  %v1158_v19 = vrot.slane %v1964_v59, %v1147_v46 }
 0x430   : > { %v2037_v53 = vadd.f32 %v996_v38, %v994_v42  ;;  %v1120_v38 = vadd.f32 %v1118_v27, %v1116_v29  ;;  %v1074_v46 = vsel %vm550_vm5, %v1072_v50, 0.0 }
 0x431   : > { %v1167_v27 = vmul.f32 %v1982_v13, %v1158_v19 }
 0x432   : > { %v1061_v51 = vmul.f32 %v1608_v55, %v2037_v53  ;;  %v1114_v57 = vpop.permute.xlu1 %1113  ;;  %v1130_v43 = vmul.f32 %v2003_v35, %v1120_v38 }
 0x433   : > { %v1117_v40 = vmul.f32 %v1114_v57, %v1107_v9 }
 0x434   : > { %v2043_v2 = vadd.f32 %v1061_v51, %v1059_v10  ;;  %v958_v51 = vsel %vm550_vm5, %v956_v30, 0.0  ;;  %v1132_v37 = vsel %vm550_vm5, %v1130_v43, 0.0 }
 0x436   : > { %v1119_v11 = vmul.f32 %v1612_v6, %v2043_v2 }
 0x437   : > { %v830_v7 = vpop.permute.xlu1 %829 }
 0x438   : > { %v833_v15 = vmul.f32 %v830_v7, %v823_v1  ;;  %v905_v1 = vmul.f32 %v1960_v58, %v2017_v0  ;;  %v2061_v54 = vadd.f32 %v1119_v11, %v1117_v40  ;;  %v1128_v58 = vpop.permute.xlu0 %1127  ;;  %v850_v7 = vrot.slane %v1958_v56, %v2075_v23 }
 0x439   : > { %v1009_v11 = vsel %vm550_vm5, %v1007_v60, 0.0 }
 0x43a   : > { %v835_v41 = vsel %vm550_vm5, %v833_v15, 0.0  ;;  %v907_v34 = vsel %vm550_vm5, %v905_v1, 0.0  ;;  %v1131_v39 = vmul.f32 %v1128_v58, %v2061_v54  ;;  %v1616_v22 = vpop.eup %1615  ;;  %v858_v12 = vrot.slane %v850_v7, %v2075_v23 }
 0x43b   : > { %v836_v14 = vadd.f32 %v835_v41, %v834_v48  ;;  %v909_v52 = vadd.f32 %v908_v3, %v907_v34  ;;  %v1618_v32 = vpop.eup %1617  ;;  %v1169_v44 = vmul.f32 %v1616_v22, %v1120_v38  ;;  %v1168_v58 = vmul.f32 %v2053_v16, %v1158_v19  ;;  %v673_v16 = vld [vmem:[%s2172_s9] sm:$0x1] }
 0x43c   : > { %v781_v31 = vpop.permute.xlu1 %780  ;;  %v1133_v55 = vsel %vm550_vm5, %v1131_v39, 0.0  ;;  %v1170_v3 = vmul.f32 %v1618_v32, %v2061_v54  ;;  %v916_v54 = vcombine.high %v858_v12, %v858_v12 }
 0x43d   : > { %v784_v21 = vmul.f32 %v781_v31, %v2007_v45  ;;  %v837_v4 = vrot.slane %v836_v14, 4  ;;  %v910_v63 = vrot.slane %v909_v52, 4  ;;  %v1134_v6 = vadd.f32 %v1133_v55, %v1132_v37 }
 0x43e   : > { %v851_v31 = vcombine.high %v850_v7, %v850_v7  ;;  %v1171_v39 = vadd.f32 %v1169_v44, %v1167_v27 }
 0x43f   : > { %v786_v0 = vsel %vm550_vm5, %v784_v21, 0.0  ;;  %v838_v35 = vadd.f32 %v837_v4, %v836_v14  ;;  %v911_v15 = vadd.f32 %v910_v63, %v909_v52  ;;  %v1135_v20 = vrot.slane %v1134_v6, 4 }
 0x440   : > { %v787_v45 = vadd.f32 %v786_v0, %v785_v33 }
 0x441   : > { %v954_v42 = vpop.permute.xlu1 %953  ;;  %v839_v17 = vrot.slane %v838_v35, 2  ;;  %v912_v8 = vrot.slane %v911_v15, 2  ;;  %v1136_v21 = vadd.f32 %v1135_v20, %v1134_v6  ;;  %v794_v20 = vmul.f32 %v1958_v56, %v673_v16 }
 0x442   : > { %v957_v62 = vmul.f32 %v954_v42, %v2026_v18  ;;  %v788_v10 = vrot.slane %v787_v45, 4 }
 0x443   : > { %v840_v48 = vadd.f32 %v839_v17, %v838_v35  ;;  %v913_v0 = vadd.f32 %v912_v8, %v911_v15  ;;  %v1137_v43 = vrot.slane %v1136_v21, 2 }
 0x444   : > { %v959_v57 = vsel %vm550_vm5, %v957_v62, 0.0  ;;  %v789_v9 = vadd.f32 %v788_v10, %v787_v45  ;;  %v865_v45 = vrot.slane %v851_v31, %v2075_v23  ;;  %v1172_v62 = vadd.f32 %v1170_v3, %v1168_v58 }
 0x445   : > { %v960_v49 = vadd.f32 %v959_v57, %v958_v51  ;;  %v841_v52 = vrot.slane %v840_v48, 1  ;;  %v914_v60 = vrot.slane %v913_v0, 1 }
 0x446   : > { %v1005_v5 = vpop.permute.xlu1 %1004  ;;  %v790_v61 = vrot.slane %v789_v9, 2 }
 0x447   : > { %v961_v18 = vrot.slane %v960_v49, 4  ;;  %v1008_v24 = vmul.f32 %v1005_v5, %v2037_v53  ;;  %v1018_v53 = vcombine.high %v1958_v56, %v1958_v56  ;;  %v867_v5 = vmul.f32 %v865_v45, %v673_v16 }
 0x448   : > { %v791_v14 = vadd.f32 %v790_v61, %v789_v9  ;;  %v842_v6 = vadd.f32 %v841_v52, %v840_v48  ;;  %v915_v17 = vadd.f32 %v914_v60, %v913_v0  ;;  %v918_v61 = vmul.f32 %v916_v54, %v673_v16  ;;  %v1619_v60 = vld [vmem:[%s1810_s14] sm:$0xff]  ;;  %s1696_s14 = smov [#allocation7]  }
 0x449   : > { %v962_v36 = vadd.f32 %v961_v18, %v960_v49  ;;  %v1010_v26 = vsel %vm550_vm5, %v1008_v24, 0.0  ;;  %v967_v18 = vcombine.high %v865_v45, %v865_v45  ;;  %v1138_v24 = vadd.f32 %v1137_v43, %v1136_v21  ;;  %s1624_s16 = sshll.u32 %s1696_s14, 4  ;;  %s1625_s16 = int_to_ptr.vmem [resolvable:$false] %s1624_s16 }
 0x44a   : > { %v1011_v47 = vadd.f32 %v1010_v26, %v1009_v11  ;;  %v792_v55 = vrot.slane %v791_v14, 1  ;;  %v919_v32 = vadd.f32 %v918_v61, %v915_v17  ;;  %s1626_s22 = scalar_lea.vmem %s1625_s16, 256  ;;  %p1627_p0 = scmp.lt.s32.totalorder %s2123_s25, %s1625_s16 }
 0x44b   : > { %v1070_v40 = vpop.permute.xlu1 %1069  ;;  %v963_v25 = vrot.slane %v962_v36, 2  ;;  %p1628_p1 = scmp.lt.s32.totalorder %s1626_s22, %s1620_s13 }
 0x44c   : > { %v1012_v41 = vrot.slane %v1011_v47, 4  ;;  %v1073_v1 = vmul.f32 %v1070_v40, %v2043_v2  ;;  %v1025_v2 = vrot.slane %v1018_v53, %v2075_v23  ;;  %v793_v15 = vadd.f32 %v792_v55, %v791_v14  ;;  %v1239_v55 = vpop.permute.xlu0 %1238 }
 0x44d   : > { %v964_v13 = vadd.f32 %v963_v25, %v962_v36  ;;  %v868_v53 = vadd.f32 %v867_v5, %v842_v6  ;;  %v969_v40 = vmul.f32 %v967_v18, %v673_v16  ;;  %v1139_v25 = vrot.slane %v1138_v24, 1  ;;  %p1629_p2 = por %p1628_p1, %p1627_p0 }
 0x44e   : > { %v1013_v59 = vadd.f32 %v1012_v41, %v1011_v47  ;;  %v1075_v28 = vsel %vm550_vm5, %v1073_v1, 0.0  ;;  %v1083_v51 = vcombine.high %v1025_v2, %v1025_v2  ;;  %v1032_v35 = vrot.slane %v1025_v2, %v2075_v23 }
 0x44f   : > { %v1076_v29 = vadd.f32 %v1075_v28, %v1074_v46  ;;  %v965_v10 = vrot.slane %v964_v13, 1  ;;  %v795_v27 = vadd.f32 %v794_v20, %v793_v15  ;;  %v1140_v21 = vadd.f32 %v1139_v25, %v1138_v24  ;;  %p1630_p3 = pnand %p1629_p2, %p1623_p13 }
 0x450   : > { %v1014_v30 = vrot.slane %v1013_v59, 2  ;;  %v1175_v33 = vpop.permute.xlu1 %1174  ;;  %v1090_v26 = vrot.slane %v1083_v51, %v2075_v23  ;;  %v1034_v41 = vmul.f32 %v1032_v35, %v673_v16  ;;  %v1141_v48 = vcombine.high %v1032_v35, %v1032_v35 }
 0x451   : > { %v1077_v34 = vrot.slane %v1076_v29, 4  ;;  %v1181_v38 = vmul.f32 %v1175_v33, %v1171_v39  ;;  %v966_v36 = vadd.f32 %v965_v10, %v964_v13  ;;  %v1200_v2 = vrot.slane %v919_v32, 6 }
 0x452   : > { %v1015_v42 = vadd.f32 %v1014_v30, %v1013_v59  ;;  %v1092_v8 = vmul.f32 %v1090_v26, %v673_v16  ;;  %v1197_v59 = vrot.slane %v868_v53, 7  ;;  %v1192_v44 = vcombine.high %v1090_v26, %v1090_v26 }
 0x453   : > { %v1078_v4 = vadd.f32 %v1077_v34, %v1076_v29  ;;  %v1183_v9 = vsel %vm550_vm5, %v1181_v38, 0.0  ;;  %v970_v12 = vadd.f32 %v969_v40, %v966_v36  ;;  %v1143_v14 = vmul.f32 %v1141_v48, %v673_v16 }
 0x454   : > { %v1179_v57 = vpop.permute.xlu1 %1178  ;;  %v1016_v63 = vrot.slane %v1015_v42, 1  ;;  %v1217_v29 = vsel %vm494_vm4, %v795_v27, %v1197_v59  ;;  %v1194_v39 = vmul.f32 %v1192_v44, %v673_v16 }
 0x455   : > { %v1079_v49 = vrot.slane %v1078_v4, 2  ;;  %v1182_v37 = vmul.f32 %v1179_v57, %v1172_v62  ;;  %v1203_v56 = vrot.slane %v970_v12, 5  ;;  %v1144_v58 = vadd.f32 %v1143_v14, %v1140_v21 }
 0x456   : > { %v1017_v47 = vadd.f32 %v1016_v63, %v1015_v42  ;;  %v1218_v0 = vsel %vm483_vm3, %v1217_v29, %v1200_v2 }
 0x457   : > { %v1080_v7 = vadd.f32 %v1079_v49, %v1078_v4  ;;  %v1184_v11 = vsel %vm550_vm5, %v1182_v37, 0.0  ;;  %v1219_v34 = vsel %vm472_vm2, %v1218_v0, %v1203_v56  ;;  %v1212_v4 = vrot.slane %v1144_v58, 2 }
 0x458   : > { %v1185_v50 = vadd.f32 %v1184_v11, %v1183_v9  ;;  %v1035_v23 = vadd.f32 %v1034_v41, %v1017_v47 }
 0x459   : > { %v1081_v19 = vrot.slane %v1080_v7, 1 }
 0x45a   : > { %v1186_v22 = vrot.slane %v1185_v50, 4  ;;  %v1206_v13 = vrot.slane %v1035_v23, 4 }
 0x45b   : > { %v1082_v1 = vadd.f32 %v1081_v19, %v1080_v7 }
 0x45c   : > { %v1187_v31 = vadd.f32 %v1186_v22, %v1185_v50  ;;  %v1221_v52 = vsel %vm1220_vm8, %v1219_v34, %v1206_v13 }
 0x45d   : > { %v1093_v46 = vadd.f32 %v1092_v8, %v1082_v1 }
 0x45e   : > { %v1188_v28 = vrot.slane %v1187_v31, 2 }
 0x45f   : > { %v1209_v30 = vrot.slane %v1093_v46, 3 }
 0x460   : > { %v1189_v3 = vadd.f32 %v1188_v28, %v1187_v31 }
 0x461   : > { %v1223_v42 = vsel %vm1222_vm9, %v1221_v52, %v1209_v30 }
 0x462   : > { %v1190_v33 = vrot.slane %v1189_v3, 1  ;;  %v1225_v62 = vsel %vm1224_vm10, %v1223_v42, %v1212_v4 }
 0x464   : > { %v1191_v45 = vadd.f32 %v1190_v33, %v1189_v3 }
 0x466   : > { %v1195_v43 = vadd.f32 %v1194_v39, %v1191_v45 }
 0x468   : > { %v1215_v38 = vrot.slane %v1195_v43, 1 }
 0x46a   : > { %v1227_v54 = vsel %vm1226_vm11, %v1225_v62, %v1215_v38 }
 0x46b   : > { %1228 = vst.msk [vmem:[#allocation6] sm:$0xff] %vm550_vm5, %v1227_v54 }
 0x472   : > { %v1229_v10 = vld [vmem:[#allocation6] sm:$0xff] }
 0x473   : > { %v1241_v51 = vmul.f32 %v1239_v55, %v1229_v10 }
 0x475   : > { %v1242_v57 = vpack.c.bf16 %v1241_v51, %v1241_v51 }
 0x477   : > { %1474 = vmatmul.mubr.msk.bf16.vlgmr.msra.gmra.mxu0 %vm550_vm5, %v1242_v57 }
 0x537   : > { %v1312_v16 = vpop.f32.mrf.mxu0 }
 0x538   : > { %v1318_v63 = vadd.f32 %v1619_v60, %v1312_v16 }
 0x539   : > { %v1475_v49 = vpop.f32.mrf.mxu0 }
 0x53a   : > { %1319 = vst.msk [vmem:[%s377_s24] sm:$0xff] %vm385_vm0, %v1318_v63 }
 0x53b   : > { %v1315_v37 = vpop.f32.mrf.mxu0 }
 0x53c   : > { %1633 = shalt.err (!%p1630_p3)
}
 0x53d   : > { %s1634_s24 = scalar_lea.hbm %s2121_s12, 128  ;;  %s1638_s30 = scalar_lea.hbm %s2174_s11, 256 }
 0x53e   : > { %p1635_p4 = scmp.ne.s32.totalorder %s2121_s12, %s1634_s24  ;;  %p1639_p9 = scmp.lt.s32.totalorder %s2121_s12, %s2174_s11 }
 0x53f   : > { %p1640_p10 = scmp.lt.s32.totalorder %s1638_s30, %s1634_s24 }
 0x540   : > { %p1636_p7 = pnand %p1635_p4, %p1795_p5 }
 0x541   : > { %p1641_p11 = por %p1640_p10, %p1639_p9 }
 0x542   : > { %p1637_p8 = pneg %p1636_p7 }
 0x544   : > { %p1642_p12 = pnand %p1641_p11, %p1637_p8 }
 0x546   : > { %1645 = shalt.err (!%p1642_p12)
}
 0x547   : > { %1477 = dma.vmem_to_hbm [thread:$0]  (%p1795_p5), %s2123_s25, 128, %s2121_s12, %s1321_s21   ;;  %v1476_v35 = vpop.f32.mrf.mxu0 }
 0x548 PF: > { %p1483_p13 = scmp.ge.s32.totalorder %s1680_s20, 2  ;;  %s1346_s13 = sand.u32 1, %s1668_s17  }
 0x549   : > { %s1347_s0 = scalar_lea.sflag [#allocation8], %s1346_s13 }
 0x54a   : > { %p1480_p0 = pnand %p1483_p13, %p1799_p6 }
 0x54c   : > { %p1481_p1 = pneg %p1480_p0 }
 0x54e   : > { %1663 = dma.done.wait (%p1481_p1), %s1347_s0, 128  }
 0x54f   : > { %1665 = vsyncadd (%p1481_p1), %s1347_s0, 4294967168  ;;  %p21_p2 = scmp.ge.s32.totalorder %s1782_s23, 4   ;;  %s2179_s17 = smov %s1672_s18 }
 0x550   : > { %s2180_s18 = smov %s1676_s19  ;;  %s2181_s19 = smov %s1793_s26 }
 0x551   : > { %s2182_s20 = smov %s1782_s23  ;;  %23 = sbr.rel (!%p21_p2) target bundleno = 5 (0x5), region = 99 }
 0x556   :  { %1352 = vsyncpa [#allocation8], 1 }
 0x557   :  { %1354 = vsyncpa [#allocation8 + $0x1], 1 }

</bundles_post_ra>
